<compile_context>
chip_gen: v6e
topology: v6e:2x2x1
jax: 0.10.0
libtpu: 0.0.40
codegen_flags: <defaults>
</compile_context>

<pallas_src>
import math

import jax
import jax.numpy as jnp
from jax import lax
from jax.experimental import pallas as pl
from jax.experimental.pallas import tpu as pltpu


# --------------------------------------------------------------------------
# Fused bidirectional RITS kernel (both directions lane-packed).
#
# Inputs (flat time-major, fwd in lanes [:D], bwd in lanes [D:2D]):
#   x, m : (T*B, 2D) f32     d : (T*B, 2D) bf16     scale : (T, 2D) f32
#   block-diagonal weights (bf16): W_g (2D,2H), W_x (2H,2D), W_ihx (2D,2H),
#     W_ihm (2D,2H), W_hh (2H,2H); concatenated biases (f32): b_g/b_h (1,2H),
#     b_x (1,2D)
# Outputs: imp (T*B, D) = averaged imputations, hat (T*B, D) = averaged x_hat,
#   loss (1,1) SMEM.
# --------------------------------------------------------------------------
def birits_kernel(x_ref, m_ref, d_ref, scale_ref,
                  wg_ref, bg_ref, wx_ref, bx_ref,
                  wihx_ref, wihm_ref, whh_ref, bh_ref,
                  imp_ref, hat_ref, loss_ref,
                  gamma_scr, pre_scr, xhat_scr):
    TB, D2 = x_ref.shape
    T = scale_ref.shape[0]
    B = TB // T
    D = D2 // 2
    H2 = whh_ref.shape[0]
    bf16 = jnp.bfloat16

    # ---------------- precompute: batched, off the serial chain ----------------
    # temporal decay gamma_t = exp(-relu(d_t W_g + b_g)), both dirs at once
    gamma_scr[...] = jnp.exp(-jnp.maximum(
        jnp.dot(d_ref[...], wg_ref[...], preferred_element_type=jnp.float32)
        + bg_ref[...], 0.0))
    # mask half of the recurrence + hidden bias: pre_t = m_t W_ih_m + b_h
    pre_scr[...] = (jnp.dot(m_ref[...].astype(bf16), wihm_ref[...],
                            preferred_element_type=jnp.float32) + bh_ref[...])

    # hoisted loop-invariant weight / bias loads (bf16 MXU operands)
    wx = wx_ref[...]
    bx = bx_ref[...]
    wihx = wihx_ref[...]
    whh = whh_ref[...]

    # ---------------- serial recurrence: both directions lane-packed ------------
    def step(t, carry):
        h, lacc = carry                           # (B, 2H) f32, (B, 2D) f32
        off = pl.multiple_of(t * B, B)
        x_t = x_ref[pl.ds(off, B), :]             # (B, 2D)
        m_t = m_ref[pl.ds(off, B), :]
        gam = gamma_scr[pl.ds(off, B), :]         # (B, 2H)
        pre = pre_scr[pl.ds(off, B), :]
        sc = scale_ref[pl.ds(t, 1), :]            # (1, 2D) = 1/(sum(m_t)+eps)

        # decay hidden state
        h = h * gam
        # history regression of the inputs
        x_hat = (jnp.dot(h.astype(bf16), wx,
                         preferred_element_type=jnp.float32) + bx)
        # masked MAE loss: vector accumulator, reduced once after the loop
        lacc = lacc + jnp.abs(x_t - x_hat) * m_t * sc
        # complement input
        x_c = x_hat + m_t * (x_t - x_hat)
        # tanh recurrence; mask half + bias already folded into pre
        h = jnp.tanh(
            jnp.dot(x_c.astype(bf16), wihx, preferred_element_type=jnp.float32)
            + jnp.dot(h.astype(bf16), whh, preferred_element_type=jnp.float32)
            + pre)
        # single combined per-step store (x_c rebuilt at merge time)
        xhat_scr[pl.ds(off, B), :] = x_hat
        return h, lacc

    h0 = jnp.zeros((B, H2), jnp.float32)
    l0 = jnp.zeros((B, D2), jnp.float32)
    _, lacc = lax.fori_loop(0, T, step, (h0, l0),
                            unroll=True if T <= 32 else 8)

    # ---------------- merge: reverse bwd dir, average, losses (runs once) -------
    cons = jnp.zeros((B, D), jnp.float32)
    for t in range(T):                            # static T; not the hot loop
        fo = t * B                                # forward-time block
        ro = (T - 1 - t) * B                      # matching reversed-time block
        xh_f = xhat_scr[pl.ds(fo, B), :]          # (B, 2D)
        xh_r = xhat_scr[pl.ds(ro, B), :]
        xc_f = xh_f + m_ref[pl.ds(fo, B), :] * (x_ref[pl.ds(fo, B), :] - xh_f)
        xc_r = xh_r + m_ref[pl.ds(ro, B), :] * (x_ref[pl.ds(ro, B), :] - xh_r)
        imp_f, imp_b = xc_f[:, :D], xc_r[:, D:]   # bwd half, time-reversed
        imp_ref[pl.ds(fo, B), :] = (imp_f + imp_b) * 0.5
        hat_ref[pl.ds(fo, B), :] = (xh_f[:, :D] + xh_r[:, D:]) * 0.5
        cons = cons + jnp.abs(imp_f - imp_b)

    loss_fb = jnp.sum(lacc)                       # loss_f + loss_b
    loss_c = jnp.sum(cons) * (0.1 / (TB * D))     # mean(|imp_f - imp_b|) * 0.1
    loss_ref[0, 0] = loss_fb + loss_c


# --------------------------------------------------------------------------
# Wrapper
# --------------------------------------------------------------------------
_VMEM = pl.BlockSpec(memory_space=pltpu.MemorySpace.VMEM)
_SMEM = pl.BlockSpec(memory_space=pltpu.MemorySpace.SMEM)


def _blkdiag(a, b):
    """[[a, 0], [0, b]] for 2-D a, b."""
    top = jnp.concatenate([a, jnp.zeros((a.shape[0], b.shape[1]), a.dtype)], 1)
    bot = jnp.concatenate([jnp.zeros((b.shape[0], a.shape[1]), b.dtype), b], 1)
    return jnp.concatenate([top, bot], axis=0)


def _padded_vmem_bytes(shape, dtype):
    """Rough tile-padded ((8|16|32) x 128) VMEM footprint of one array."""
    itemsize = jnp.dtype(dtype).itemsize
    sub = max(1, 32 // itemsize)
    rows = math.prod(shape[:-1]) if len(shape) > 1 else 1
    cols = shape[-1] if len(shape) >= 1 else 1
    return (-(-rows // sub) * sub) * (-(-cols // 128) * 128) * itemsize


def birnn_forward(params_f, params_b, x_f, m_f, d_f, x_b, m_b, d_b):
    """x/masks/deltas: (B, T, D) for each direction. Returns dict like birnn.py."""
    B, T, D = x_f.shape
    H = params_f['W_hh'].shape[0]
    f32, bf16 = jnp.float32, jnp.bfloat16
    assert B % 8 == 0, "batch must be a multiple of 8 (f32 sublane alignment)"

    def prep(a):  # (B, T, D) -> flat time-major (T*B, D)
        return jnp.transpose(a.astype(f32), (1, 0, 2)).reshape(T * B, D)

    # lane-pack the two directions: fwd in lanes [:D], bwd in lanes [D:2D]
    x2 = jnp.concatenate([prep(x_f), prep(x_b)], axis=1)            # (T*B, 2D)
    m2 = jnp.concatenate([prep(m_f), prep(m_b)], axis=1)
    d2 = jnp.concatenate([prep(d_f), prep(d_b)], axis=1).astype(bf16)

    # per-step loss scales 1/(sum(m_t)+1e-5), broadcast over each lane half
    inv_f = 1.0 / (m_f.astype(f32).sum(axis=(0, 2)) + 1e-5)         # (T,)
    inv_b = 1.0 / (m_b.astype(f32).sum(axis=(0, 2)) + 1e-5)
    scale = jnp.concatenate([jnp.repeat(inv_f[:, None], D, axis=1),
                             jnp.repeat(inv_b[:, None], D, axis=1)], axis=1)

    def bdiag(key):
        return _blkdiag(params_f[key].astype(f32),
                        params_b[key].astype(f32)).astype(bf16)

    def bcat(key):
        return jnp.concatenate([params_f[key], params_b[key]], 1).astype(f32)

    wg, wx, whh = bdiag('W_gamma'), bdiag('W_x'), bdiag('W_hh')
    wihx = _blkdiag(params_f['W_ih'][:D].astype(f32),
                    params_b['W_ih'][:D].astype(f32)).astype(bf16)
    wihm = _blkdiag(params_f['W_ih'][D:].astype(f32),
                    params_b['W_ih'][D:].astype(f32)).astype(bf16)
    bg, bx, bh = bcat('b_gamma'), bcat('b_x'), bcat('b_h')

    # explicit VMEM budget (v7x: 64 MiB physical, 32 MiB scoped default)
    tensors = [(x2.shape, x2.dtype), (m2.shape, m2.dtype), (d2.shape, d2.dtype),
               (scale.shape, scale.dtype),
               (wg.shape, wg.dtype), (bg.shape, bg.dtype), (wx.shape, wx.dtype),
               (bx.shape, bx.dtype), (wihx.shape, wihx.dtype),
               (wihm.shape, wihm.dtype), (whh.shape, whh.dtype),
               (bh.shape, bh.dtype),
               ((T * B, D), f32), ((T * B, D), f32),                 # outputs
               ((T * B, 2 * H), f32), ((T * B, 2 * H), f32),         # gamma / pre
               ((T * B, 2 * D), f32)]                                # x_hat scratch
    foot = sum(_padded_vmem_bytes(s, dt) for s, dt in tensors)
    vmem_limit = int(min(max(2 * foot + (4 << 20), 32 << 20), 64 << 20))

    imp, hat, loss = pl.pallas_call(
        birits_kernel,
        out_shape=(jax.ShapeDtypeStruct((T * B, D), f32),
                   jax.ShapeDtypeStruct((T * B, D), f32),
                   jax.ShapeDtypeStruct((1, 1), f32)),
        in_specs=[_VMEM] * 12,
        out_specs=(_VMEM, _VMEM, _SMEM),
        scratch_shapes=[pltpu.VMEM((T * B, 2 * H), f32),   # gammas (both dirs)
                        pltpu.VMEM((T * B, 2 * H), f32),   # mask-recurrence pre
                        pltpu.VMEM((T * B, 2 * D), f32)],  # x_hat (both dirs)
        compiler_params=pltpu.CompilerParams(vmem_limit_bytes=vmem_limit),
    )(x2, m2, d2, scale, wg, bg, wx, bx, wihx, wihm, whh, bh)

    imputations = imp.reshape(T, B, D).transpose(1, 0, 2)            # (B, T, D)
    x_hat_avg = hat.reshape(T, B, D).transpose(1, 0, 2)
    ensembles = jnp.stack([x_hat_avg, imputations], axis=1)          # (B, 2, T, D)
    return {'loss': loss[0, 0], 'imputations': imputations,
            'ensembles': ensembles}


# --------------------------------------------------------------------------
# Deterministic parameter init (shapes implied by the RITS cell above)
# --------------------------------------------------------------------------
def init_rits_params(key, D, H):
    ks = jax.random.split(key, 7)
    s = 0.1
    return {
        'W_gamma': jax.random.normal(ks[0], (D, H), jnp.float32) * s,
        'b_gamma': jax.random.normal(ks[1], (1, H), jnp.float32) * s,
        'W_x':     jax.random.normal(ks[2], (H, D), jnp.float32) * s,
        'b_x':     jax.random.normal(ks[3], (1, D), jnp.float32) * s,
        'W_ih':    jax.random.normal(ks[4], (2 * D, H), jnp.float32) * s,
        'W_hh':    jax.random.normal(ks[5], (H, H), jnp.float32) * s,
        'b_h':     jax.random.normal(ks[6], (1, H), jnp.float32) * s,
    }


if __name__ == "__main__":
    B, T, D, H = 8, 8, 16, 32   # batch, seq, features, rnn_hid_size

    root = jax.random.PRNGKey(0)
    k_pf, k_pb, k_x, k_m, k_d = jax.random.split(root, 5)

    params_f = init_rits_params(k_pf, D, H)
    params_b = init_rits_params(k_pb, D, H)

    x_f = jax.random.normal(k_x, (B, T, D), jnp.float32)
    m_f = (jax.random.uniform(k_m, (B, T, D)) > 0.3).astype(jnp.float32)
    d_f = jax.random.uniform(k_d, (B, T, D), jnp.float32)

    # backward-direction inputs: time-reversed series.
    # TODO(synk): real BRITS recomputes backward deltas for the reversed
    # series (time gaps differ per direction); flipped deltas used only as a
    # self-contained demo input.
    x_b = jnp.flip(x_f, axis=1)
    m_b = jnp.flip(m_f, axis=1)
    d_b = jnp.flip(d_f, axis=1)

    run = jax.jit(birnn_forward)
    ret = run(params_f, params_b, x_f, m_f, d_f, x_b, m_b, d_b)
    jax.block_until_ready(ret['loss'])
    jax.block_until_ready(ret['imputations'])
    jax.block_until_ready(ret['ensembles'])

    assert ret['imputations'].shape == (B, T, D)
    assert ret['ensembles'].shape == (B, 2, T, D)
    assert ret['loss'].shape == ()
    print("KERNEL_OK")
</pallas_src>

<mosaic_0001>
module attributes {stable_mosaic.version = 11 : i64} {
  func.func @birits_kernel(%arg0: memref<64x32xf32, #tpu.memory_space<vmem>>, %arg1: memref<64x32xf32, #tpu.memory_space<vmem>>, %arg2: memref<64x32xbf16, #tpu.memory_space<vmem>>, %arg3: memref<8x32xf32, #tpu.memory_space<vmem>>, %arg4: memref<32x64xbf16, #tpu.memory_space<vmem>>, %arg5: memref<1x64xf32, #tpu.memory_space<vmem>>, %arg6: memref<64x32xbf16, #tpu.memory_space<vmem>>, %arg7: memref<1x32xf32, #tpu.memory_space<vmem>>, %arg8: memref<32x64xbf16, #tpu.memory_space<vmem>>, %arg9: memref<32x64xbf16, #tpu.memory_space<vmem>>, %arg10: memref<64x64xbf16, #tpu.memory_space<vmem>>, %arg11: memref<1x64xf32, #tpu.memory_space<vmem>>, %arg12: memref<64x16xf32, #tpu.memory_space<vmem>>, %arg13: memref<64x16xf32, #tpu.memory_space<vmem>>, %arg14: memref<1x1xf32, #tpu.memory_space<smem>>, %arg15: memref<64x64xf32, #tpu.memory_space<vmem>>, %arg16: memref<64x64xf32, #tpu.memory_space<vmem>>, %arg17: memref<64x32xf32, #tpu.memory_space<vmem>>) attributes {dimension_semantics = [], scalar_prefetch = 0 : i64, scratch_operands = 3 : i64, tpu.core_type = #tpu.core_type<tc>} {
    %c0 = arith.constant 0 : index
    %c0_0 = arith.constant 0 : index
    %0 = vector.load %arg2[%c0, %c0_0] : memref<64x32xbf16, #tpu.memory_space<vmem>>, vector<64x32xbf16>
    %c0_1 = arith.constant 0 : index
    %c0_2 = arith.constant 0 : index
    %1 = vector.load %arg4[%c0_1, %c0_2] : memref<32x64xbf16, #tpu.memory_space<vmem>>, vector<32x64xbf16>
    %cst = arith.constant dense<0.000000e+00> : vector<64x64xf32>
    %2 = tpu.matmul %0, %1, %cst {dimension_numbers = #tpu.dot_dimension_numbers<[1], [0], [0], [1], [0, 0, 1, 1], [], []>} : vector<64x32xbf16>, vector<32x64xbf16>, vector<64x64xf32> -> vector<64x64xf32>
    %c0_3 = arith.constant 0 : index
    %c0_4 = arith.constant 0 : index
    %3 = vector.load %arg5[%c0_3, %c0_4] : memref<1x64xf32, #tpu.memory_space<vmem>>, vector<1x64xf32>
    %4 = vector.broadcast %3 : vector<1x64xf32> to vector<64x64xf32>
    %5 = arith.addf %2, %4 : vector<64x64xf32>
    %cst_5 = arith.constant 0.000000e+00 : f32
    %6 = vector.broadcast %cst_5 : f32 to vector<64x64xf32>
    %7 = arith.maximumf %5, %6 : vector<64x64xf32>
    %cst_6 = arith.constant 0.000000e+00 : f32
    %8 = vector.broadcast %cst_6 : f32 to vector<64x64xf32>
    %9 = arith.subf %8, %7 : vector<64x64xf32>
    %10 = math.exp %9 : vector<64x64xf32>
    %c0_7 = arith.constant 0 : index
    %c0_8 = arith.constant 0 : index
    %11 = vector.load %arg15[%c0_7, %c0_8] : memref<64x64xf32, #tpu.memory_space<vmem>>, vector<64x64xf32>
    tpu.vector_store %arg15[%c0_7, %c0_8], %10 {strides = array<i32>} : memref<64x64xf32, #tpu.memory_space<vmem>>, vector<64x64xf32>,
    %c0_9 = arith.constant 0 : index
    %c0_10 = arith.constant 0 : index
    %12 = vector.load %arg1[%c0_9, %c0_10] : memref<64x32xf32, #tpu.memory_space<vmem>>, vector<64x32xf32>
    %13 = arith.truncf %12 : vector<64x32xf32> to vector<64x32xbf16>
    %c0_11 = arith.constant 0 : index
    %c0_12 = arith.constant 0 : index
    %14 = vector.load %arg9[%c0_11, %c0_12] : memref<32x64xbf16, #tpu.memory_space<vmem>>, vector<32x64xbf16>
    %cst_13 = arith.constant dense<0.000000e+00> : vector<64x64xf32>
    %15 = tpu.matmul %13, %14, %cst_13 {dimension_numbers = #tpu.dot_dimension_numbers<[1], [0], [0], [1], [0, 0, 1, 1], [], []>} : vector<64x32xbf16>, vector<32x64xbf16>, vector<64x64xf32> -> vector<64x64xf32>
    %c0_14 = arith.constant 0 : index
    %c0_15 = arith.constant 0 : index
    %16 = vector.load %arg11[%c0_14, %c0_15] : memref<1x64xf32, #tpu.memory_space<vmem>>, vector<1x64xf32>
    %17 = vector.broadcast %16 : vector<1x64xf32> to vector<64x64xf32>
    %18 = arith.addf %15, %17 : vector<64x64xf32>
    %c0_16 = arith.constant 0 : index
    %c0_17 = arith.constant 0 : index
    %19 = vector.load %arg16[%c0_16, %c0_17] : memref<64x64xf32, #tpu.memory_space<vmem>>, vector<64x64xf32>
    tpu.vector_store %arg16[%c0_16, %c0_17], %18 {strides = array<i32>} : memref<64x64xf32, #tpu.memory_space<vmem>>, vector<64x64xf32>,
    %c0_18 = arith.constant 0 : index
    %c0_19 = arith.constant 0 : index
    %20 = vector.load %arg6[%c0_18, %c0_19] : memref<64x32xbf16, #tpu.memory_space<vmem>>, vector<64x32xbf16>
    %c0_20 = arith.constant 0 : index
    %c0_21 = arith.constant 0 : index
    %21 = vector.load %arg7[%c0_20, %c0_21] : memref<1x32xf32, #tpu.memory_space<vmem>>, vector<1x32xf32>
    %c0_22 = arith.constant 0 : index
    %c0_23 = arith.constant 0 : index
    %22 = vector.load %arg8[%c0_22, %c0_23] : memref<32x64xbf16, #tpu.memory_space<vmem>>, vector<32x64xbf16>
    %c0_24 = arith.constant 0 : index
    %c0_25 = arith.constant 0 : index
    %23 = vector.load %arg10[%c0_24, %c0_25] : memref<64x64xbf16, #tpu.memory_space<vmem>>, vector<64x64xbf16>
    %cst_26 = arith.constant 0.000000e+00 : f32
    %24 = vector.broadcast %cst_26 : f32 to vector<8x64xf32>
    %cst_27 = arith.constant 0.000000e+00 : f32
    %25 = vector.broadcast %cst_27 : f32 to vector<8x32xf32>
    %c0_i32 = arith.constant 0 : i32
    %c8_i32 = arith.constant 8 : i32
    %26 = arith.muli %c0_i32, %c8_i32 : i32
    %27 = tpu.assume_multiple %26, 8 : i32
    %28 = arith.index_cast %27 : i32 to index
    %c0_28 = arith.constant 0 : index
    %29 = vector.load %arg0[%28, %c0_28] : memref<64x32xf32, #tpu.memory_space<vmem>>, vector<8x32xf32>
    %30 = arith.index_cast %27 : i32 to index
    %c0_29 = arith.constant 0 : index
    %31 = vector.load %arg1[%30, %c0_29] : memref<64x32xf32, #tpu.memory_space<vmem>>, vector<8x32xf32>
    %32 = arith.index_cast %27 : i32 to index
    %c0_30 = arith.constant 0 : index
    %33 = vector.load %arg15[%32, %c0_30] : memref<64x64xf32, #tpu.memory_space<vmem>>, vector<8x64xf32>
    %34 = arith.index_cast %27 : i32 to index
    %c0_31 = arith.constant 0 : index
    %35 = vector.load %arg16[%34, %c0_31] : memref<64x64xf32, #tpu.memory_space<vmem>>, vector<8x64xf32>
    %36 = arith.index_cast %c0_i32 : i32 to index
    %c0_32 = arith.constant 0 : index
    %37 = vector.load %arg3[%36, %c0_32] : memref<8x32xf32, #tpu.memory_space<vmem>>, vector<1x32xf32>
    %38 = arith.mulf %24, %33 : vector<8x64xf32>
    %39 = arith.truncf %38 : vector<8x64xf32> to vector<8x64xbf16>
    %cst_33 = arith.constant dense<0.000000e+00> : vector<8x32xf32>
    %40 = tpu.matmul %39, %20, %cst_33 {dimension_numbers = #tpu.dot_dimension_numbers<[1], [0], [0], [1], [0, 0, 1, 1], [], []>} : vector<8x64xbf16>, vector<64x32xbf16>, vector<8x32xf32> -> vector<8x32xf32>
    %41 = vector.broadcast %21 : vector<1x32xf32> to vector<8x32xf32>
    %42 = arith.addf %40, %41 : vector<8x32xf32>
    %43 = arith.subf %29, %42 : vector<8x32xf32>
    %44 = math.absf %43 : vector<8x32xf32>
    %45 = arith.mulf %44, %31 : vector<8x32xf32>
    %46 = vector.broadcast %37 : vector<1x32xf32> to vector<8x32xf32>
    %47 = arith.mulf %45, %46 : vector<8x32xf32>
    %48 = arith.addf %25, %47 : vector<8x32xf32>
    %49 = arith.subf %29, %42 : vector<8x32xf32>
    %50 = arith.mulf %31, %49 : vector<8x32xf32>
    %51 = arith.addf %42, %50 : vector<8x32xf32>
    %52 = arith.truncf %51 : vector<8x32xf32> to vector<8x32xbf16>
    %cst_34 = arith.constant dense<0.000000e+00> : vector<8x64xf32>
    %53 = tpu.matmul %52, %22, %cst_34 {dimension_numbers = #tpu.dot_dimension_numbers<[1], [0], [0], [1], [0, 0, 1, 1], [], []>} : vector<8x32xbf16>, vector<32x64xbf16>, vector<8x64xf32> -> vector<8x64xf32>
    %54 = arith.truncf %38 : vector<8x64xf32> to vector<8x64xbf16>
    %cst_35 = arith.constant dense<0.000000e+00> : vector<8x64xf32>
    %55 = tpu.matmul %54, %23, %cst_35 {dimension_numbers = #tpu.dot_dimension_numbers<[1], [0], [0], [1], [0, 0, 1, 1], [], []>} : vector<8x64xbf16>, vector<64x64xbf16>, vector<8x64xf32> -> vector<8x64xf32>
    %56 = arith.addf %53, %55 : vector<8x64xf32>
    %57 = arith.addf %56, %35 : vector<8x64xf32>
    %58 = math.tanh %57 : vector<8x64xf32>
    %59 = arith.index_cast %27 : i32 to index
    %c0_36 = arith.constant 0 : index
    %60 = vector.load %arg17[%59, %c0_36] : memref<64x32xf32, #tpu.memory_space<vmem>>, vector<8x32xf32>
    tpu.vector_store %arg17[%59, %c0_36], %42 {strides = array<i32>} : memref<64x32xf32, #tpu.memory_space<vmem>>, vector<8x32xf32>,
    %c1_i32 = arith.constant 1 : i32
    %c8_i32_37 = arith.constant 8 : i32
    %61 = arith.muli %c1_i32, %c8_i32_37 : i32
    %62 = tpu.assume_multiple %61, 8 : i32
    %63 = arith.index_cast %62 : i32 to index
    %c0_38 = arith.constant 0 : index
    %64 = vector.load %arg0[%63, %c0_38] : memref<64x32xf32, #tpu.memory_space<vmem>>, vector<8x32xf32>
    %65 = arith.index_cast %62 : i32 to index
    %c0_39 = arith.constant 0 : index
    %66 = vector.load %arg1[%65, %c0_39] : memref<64x32xf32, #tpu.memory_space<vmem>>, vector<8x32xf32>
    %67 = arith.index_cast %62 : i32 to index
    %c0_40 = arith.constant 0 : index
    %68 = vector.load %arg15[%67, %c0_40] : memref<64x64xf32, #tpu.memory_space<vmem>>, vector<8x64xf32>
    %69 = arith.index_cast %62 : i32 to index
    %c0_41 = arith.constant 0 : index
    %70 = vector.load %arg16[%69, %c0_41] : memref<64x64xf32, #tpu.memory_space<vmem>>, vector<8x64xf32>
    %71 = arith.index_cast %c1_i32 : i32 to index
    %c0_42 = arith.constant 0 : index
    %72 = vector.load %arg3[%71, %c0_42] : memref<8x32xf32, #tpu.memory_space<vmem>>, vector<1x32xf32>
    %73 = arith.mulf %58, %68 : vector<8x64xf32>
    %74 = arith.truncf %73 : vector<8x64xf32> to vector<8x64xbf16>
    %cst_43 = arith.constant dense<0.000000e+00> : vector<8x32xf32>
    %75 = tpu.matmul %74, %20, %cst_43 {dimension_numbers = #tpu.dot_dimension_numbers<[1], [0], [0], [1], [0, 0, 1, 1], [], []>} : vector<8x64xbf16>, vector<64x32xbf16>, vector<8x32xf32> -> vector<8x32xf32>
    %76 = vector.broadcast %21 : vector<1x32xf32> to vector<8x32xf32>
    %77 = arith.addf %75, %76 : vector<8x32xf32>
    %78 = arith.subf %64, %77 : vector<8x32xf32>
    %79 = math.absf %78 : vector<8x32xf32>
    %80 = arith.mulf %79, %66 : vector<8x32xf32>
    %81 = vector.broadcast %72 : vector<1x32xf32> to vector<8x32xf32>
    %82 = arith.mulf %80, %81 : vector<8x32xf32>
    %83 = arith.addf %48, %82 : vector<8x32xf32>
    %84 = arith.subf %64, %77 : vector<8x32xf32>
    %85 = arith.mulf %66, %84 : vector<8x32xf32>
    %86 = arith.addf %77, %85 : vector<8x32xf32>
    %87 = arith.truncf %86 : vector<8x32xf32> to vector<8x32xbf16>
    %cst_44 = arith.constant dense<0.000000e+00> : vector<8x64xf32>
    %88 = tpu.matmul %87, %22, %cst_44 {dimension_numbers = #tpu.dot_dimension_numbers<[1], [0], [0], [1], [0, 0, 1, 1], [], []>} : vector<8x32xbf16>, vector<32x64xbf16>, vector<8x64xf32> -> vector<8x64xf32>
    %89 = arith.truncf %73 : vector<8x64xf32> to vector<8x64xbf16>
    %cst_45 = arith.constant dense<0.000000e+00> : vector<8x64xf32>
    %90 = tpu.matmul %89, %23, %cst_45 {dimension_numbers = #tpu.dot_dimension_numbers<[1], [0], [0], [1], [0, 0, 1, 1], [], []>} : vector<8x64xbf16>, vector<64x64xbf16>, vector<8x64xf32> -> vector<8x64xf32>
    %91 = arith.addf %88, %90 : vector<8x64xf32>
    %92 = arith.addf %91, %70 : vector<8x64xf32>
    %93 = math.tanh %92 : vector<8x64xf32>
    %94 = arith.index_cast %62 : i32 to index
    %c0_46 = arith.constant 0 : index
    %95 = vector.load %arg17[%94, %c0_46] : memref<64x32xf32, #tpu.memory_space<vmem>>, vector<8x32xf32>
    tpu.vector_store %arg17[%94, %c0_46], %77 {strides = array<i32>} : memref<64x32xf32, #tpu.memory_space<vmem>>, vector<8x32xf32>,
    %c2_i32 = arith.constant 2 : i32
    %c8_i32_47 = arith.constant 8 : i32
    %96 = arith.muli %c2_i32, %c8_i32_47 : i32
    %97 = tpu.assume_multiple %96, 8 : i32
    %98 = arith.index_cast %97 : i32 to index
    %c0_48 = arith.constant 0 : index
    %99 = vector.load %arg0[%98, %c0_48] : memref<64x32xf32, #tpu.memory_space<vmem>>, vector<8x32xf32>
    %100 = arith.index_cast %97 : i32 to index
    %c0_49 = arith.constant 0 : index
    %101 = vector.load %arg1[%100, %c0_49] : memref<64x32xf32, #tpu.memory_space<vmem>>, vector<8x32xf32>
    %102 = arith.index_cast %97 : i32 to index
    %c0_50 = arith.constant 0 : index
    %103 = vector.load %arg15[%102, %c0_50] : memref<64x64xf32, #tpu.memory_space<vmem>>, vector<8x64xf32>
    %104 = arith.index_cast %97 : i32 to index
    %c0_51 = arith.constant 0 : index
    %105 = vector.load %arg16[%104, %c0_51] : memref<64x64xf32, #tpu.memory_space<vmem>>, vector<8x64xf32>
    %106 = arith.index_cast %c2_i32 : i32 to index
    %c0_52 = arith.constant 0 : index
    %107 = vector.load %arg3[%106, %c0_52] : memref<8x32xf32, #tpu.memory_space<vmem>>, vector<1x32xf32>
    %108 = arith.mulf %93, %103 : vector<8x64xf32>
    %109 = arith.truncf %108 : vector<8x64xf32> to vector<8x64xbf16>
    %cst_53 = arith.constant dense<0.000000e+00> : vector<8x32xf32>
    %110 = tpu.matmul %109, %20, %cst_53 {dimension_numbers = #tpu.dot_dimension_numbers<[1], [0], [0], [1], [0, 0, 1, 1], [], []>} : vector<8x64xbf16>, vector<64x32xbf16>, vector<8x32xf32> -> vector<8x32xf32>
    %111 = vector.broadcast %21 : vector<1x32xf32> to vector<8x32xf32>
    %112 = arith.addf %110, %111 : vector<8x32xf32>
    %113 = arith.subf %99, %112 : vector<8x32xf32>
    %114 = math.absf %113 : vector<8x32xf32>
    %115 = arith.mulf %114, %101 : vector<8x32xf32>
    %116 = vector.broadcast %107 : vector<1x32xf32> to vector<8x32xf32>
    %117 = arith.mulf %115, %116 : vector<8x32xf32>
    %118 = arith.addf %83, %117 : vector<8x32xf32>
    %119 = arith.subf %99, %112 : vector<8x32xf32>
    %120 = arith.mulf %101, %119 : vector<8x32xf32>
    %121 = arith.addf %112, %120 : vector<8x32xf32>
    %122 = arith.truncf %121 : vector<8x32xf32> to vector<8x32xbf16>
    %cst_54 = arith.constant dense<0.000000e+00> : vector<8x64xf32>
    %123 = tpu.matmul %122, %22, %cst_54 {dimension_numbers = #tpu.dot_dimension_numbers<[1], [0], [0], [1], [0, 0, 1, 1], [], []>} : vector<8x32xbf16>, vector<32x64xbf16>, vector<8x64xf32> -> vector<8x64xf32>
    %124 = arith.truncf %108 : vector<8x64xf32> to vector<8x64xbf16>
    %cst_55 = arith.constant dense<0.000000e+00> : vector<8x64xf32>
    %125 = tpu.matmul %124, %23, %cst_55 {dimension_numbers = #tpu.dot_dimension_numbers<[1], [0], [0], [1], [0, 0, 1, 1], [], []>} : vector<8x64xbf16>, vector<64x64xbf16>, vector<8x64xf32> -> vector<8x64xf32>
    %126 = arith.addf %123, %125 : vector<8x64xf32>
    %127 = arith.addf %126, %105 : vector<8x64xf32>
    %128 = math.tanh %127 : vector<8x64xf32>
    %129 = arith.index_cast %97 : i32 to index
    %c0_56 = arith.constant 0 : index
    %130 = vector.load %arg17[%129, %c0_56] : memref<64x32xf32, #tpu.memory_space<vmem>>, vector<8x32xf32>
    tpu.vector_store %arg17[%129, %c0_56], %112 {strides = array<i32>} : memref<64x32xf32, #tpu.memory_space<vmem>>, vector<8x32xf32>,
    %c3_i32 = arith.constant 3 : i32
    %c8_i32_57 = arith.constant 8 : i32
    %131 = arith.muli %c3_i32, %c8_i32_57 : i32
    %132 = tpu.assume_multiple %131, 8 : i32
    %133 = arith.index_cast %132 : i32 to index
    %c0_58 = arith.constant 0 : index
    %134 = vector.load %arg0[%133, %c0_58] : memref<64x32xf32, #tpu.memory_space<vmem>>, vector<8x32xf32>
    %135 = arith.index_cast %132 : i32 to index
    %c0_59 = arith.constant 0 : index
    %136 = vector.load %arg1[%135, %c0_59] : memref<64x32xf32, #tpu.memory_space<vmem>>, vector<8x32xf32>
    %137 = arith.index_cast %132 : i32 to index
    %c0_60 = arith.constant 0 : index
    %138 = vector.load %arg15[%137, %c0_60] : memref<64x64xf32, #tpu.memory_space<vmem>>, vector<8x64xf32>
    %139 = arith.index_cast %132 : i32 to index
    %c0_61 = arith.constant 0 : index
    %140 = vector.load %arg16[%139, %c0_61] : memref<64x64xf32, #tpu.memory_space<vmem>>, vector<8x64xf32>
    %141 = arith.index_cast %c3_i32 : i32 to index
    %c0_62 = arith.constant 0 : index
    %142 = vector.load %arg3[%141, %c0_62] : memref<8x32xf32, #tpu.memory_space<vmem>>, vector<1x32xf32>
    %143 = arith.mulf %128, %138 : vector<8x64xf32>
    %144 = arith.truncf %143 : vector<8x64xf32> to vector<8x64xbf16>
    %cst_63 = arith.constant dense<0.000000e+00> : vector<8x32xf32>
    %145 = tpu.matmul %144, %20, %cst_63 {dimension_numbers = #tpu.dot_dimension_numbers<[1], [0], [0], [1], [0, 0, 1, 1], [], []>} : vector<8x64xbf16>, vector<64x32xbf16>, vector<8x32xf32> -> vector<8x32xf32>
    %146 = vector.broadcast %21 : vector<1x32xf32> to vector<8x32xf32>
    %147 = arith.addf %145, %146 : vector<8x32xf32>
    %148 = arith.subf %134, %147 : vector<8x32xf32>
    %149 = math.absf %148 : vector<8x32xf32>
    %150 = arith.mulf %149, %136 : vector<8x32xf32>
    %151 = vector.broadcast %142 : vector<1x32xf32> to vector<8x32xf32>
    %152 = arith.mulf %150, %151 : vector<8x32xf32>
    %153 = arith.addf %118, %152 : vector<8x32xf32>
    %154 = arith.subf %134, %147 : vector<8x32xf32>
    %155 = arith.mulf %136, %154 : vector<8x32xf32>
    %156 = arith.addf %147, %155 : vector<8x32xf32>
    %157 = arith.truncf %156 : vector<8x32xf32> to vector<8x32xbf16>
    %cst_64 = arith.constant dense<0.000000e+00> : vector<8x64xf32>
    %158 = tpu.matmul %157, %22, %cst_64 {dimension_numbers = #tpu.dot_dimension_numbers<[1], [0], [0], [1], [0, 0, 1, 1], [], []>} : vector<8x32xbf16>, vector<32x64xbf16>, vector<8x64xf32> -> vector<8x64xf32>
    %159 = arith.truncf %143 : vector<8x64xf32> to vector<8x64xbf16>
    %cst_65 = arith.constant dense<0.000000e+00> : vector<8x64xf32>
    %160 = tpu.matmul %159, %23, %cst_65 {dimension_numbers = #tpu.dot_dimension_numbers<[1], [0], [0], [1], [0, 0, 1, 1], [], []>} : vector<8x64xbf16>, vector<64x64xbf16>, vector<8x64xf32> -> vector<8x64xf32>
    %161 = arith.addf %158, %160 : vector<8x64xf32>
    %162 = arith.addf %161, %140 : vector<8x64xf32>
    %163 = math.tanh %162 : vector<8x64xf32>
    %164 = arith.index_cast %132 : i32 to index
    %c0_66 = arith.constant 0 : index
    %165 = vector.load %arg17[%164, %c0_66] : memref<64x32xf32, #tpu.memory_space<vmem>>, vector<8x32xf32>
    tpu.vector_store %arg17[%164, %c0_66], %147 {strides = array<i32>} : memref<64x32xf32, #tpu.memory_space<vmem>>, vector<8x32xf32>,
    %c4_i32 = arith.constant 4 : i32
    %c8_i32_67 = arith.constant 8 : i32
    %166 = arith.muli %c4_i32, %c8_i32_67 : i32
    %167 = tpu.assume_multiple %166, 8 : i32
    %168 = arith.index_cast %167 : i32 to index
    %c0_68 = arith.constant 0 : index
    %169 = vector.load %arg0[%168, %c0_68] : memref<64x32xf32, #tpu.memory_space<vmem>>, vector<8x32xf32>
    %170 = arith.index_cast %167 : i32 to index
    %c0_69 = arith.constant 0 : index
    %171 = vector.load %arg1[%170, %c0_69] : memref<64x32xf32, #tpu.memory_space<vmem>>, vector<8x32xf32>
    %172 = arith.index_cast %167 : i32 to index
    %c0_70 = arith.constant 0 : index
    %173 = vector.load %arg15[%172, %c0_70] : memref<64x64xf32, #tpu.memory_space<vmem>>, vector<8x64xf32>
    %174 = arith.index_cast %167 : i32 to index
    %c0_71 = arith.constant 0 : index
    %175 = vector.load %arg16[%174, %c0_71] : memref<64x64xf32, #tpu.memory_space<vmem>>, vector<8x64xf32>
    %176 = arith.index_cast %c4_i32 : i32 to index
    %c0_72 = arith.constant 0 : index
    %177 = vector.load %arg3[%176, %c0_72] : memref<8x32xf32, #tpu.memory_space<vmem>>, vector<1x32xf32>
    %178 = arith.mulf %163, %173 : vector<8x64xf32>
    %179 = arith.truncf %178 : vector<8x64xf32> to vector<8x64xbf16>
    %cst_73 = arith.constant dense<0.000000e+00> : vector<8x32xf32>
    %180 = tpu.matmul %179, %20, %cst_73 {dimension_numbers = #tpu.dot_dimension_numbers<[1], [0], [0], [1], [0, 0, 1, 1], [], []>} : vector<8x64xbf16>, vector<64x32xbf16>, vector<8x32xf32> -> vector<8x32xf32>
    %181 = vector.broadcast %21 : vector<1x32xf32> to vector<8x32xf32>
    %182 = arith.addf %180, %181 : vector<8x32xf32>
    %183 = arith.subf %169, %182 : vector<8x32xf32>
    %184 = math.absf %183 : vector<8x32xf32>
    %185 = arith.mulf %184, %171 : vector<8x32xf32>
    %186 = vector.broadcast %177 : vector<1x32xf32> to vector<8x32xf32>
    %187 = arith.mulf %185, %186 : vector<8x32xf32>
    %188 = arith.addf %153, %187 : vector<8x32xf32>
    %189 = arith.subf %169, %182 : vector<8x32xf32>
    %190 = arith.mulf %171, %189 : vector<8x32xf32>
    %191 = arith.addf %182, %190 : vector<8x32xf32>
    %192 = arith.truncf %191 : vector<8x32xf32> to vector<8x32xbf16>
    %cst_74 = arith.constant dense<0.000000e+00> : vector<8x64xf32>
    %193 = tpu.matmul %192, %22, %cst_74 {dimension_numbers = #tpu.dot_dimension_numbers<[1], [0], [0], [1], [0, 0, 1, 1], [], []>} : vector<8x32xbf16>, vector<32x64xbf16>, vector<8x64xf32> -> vector<8x64xf32>
    %194 = arith.truncf %178 : vector<8x64xf32> to vector<8x64xbf16>
    %cst_75 = arith.constant dense<0.000000e+00> : vector<8x64xf32>
    %195 = tpu.matmul %194, %23, %cst_75 {dimension_numbers = #tpu.dot_dimension_numbers<[1], [0], [0], [1], [0, 0, 1, 1], [], []>} : vector<8x64xbf16>, vector<64x64xbf16>, vector<8x64xf32> -> vector<8x64xf32>
    %196 = arith.addf %193, %195 : vector<8x64xf32>
    %197 = arith.addf %196, %175 : vector<8x64xf32>
    %198 = math.tanh %197 : vector<8x64xf32>
    %199 = arith.index_cast %167 : i32 to index
    %c0_76 = arith.constant 0 : index
    %200 = vector.load %arg17[%199, %c0_76] : memref<64x32xf32, #tpu.memory_space<vmem>>, vector<8x32xf32>
    tpu.vector_store %arg17[%199, %c0_76], %182 {strides = array<i32>} : memref<64x32xf32, #tpu.memory_space<vmem>>, vector<8x32xf32>,
    %c5_i32 = arith.constant 5 : i32
    %c8_i32_77 = arith.constant 8 : i32
    %201 = arith.muli %c5_i32, %c8_i32_77 : i32
    %202 = tpu.assume_multiple %201, 8 : i32
    %203 = arith.index_cast %202 : i32 to index
    %c0_78 = arith.constant 0 : index
    %204 = vector.load %arg0[%203, %c0_78] : memref<64x32xf32, #tpu.memory_space<vmem>>, vector<8x32xf32>
    %205 = arith.index_cast %202 : i32 to index
    %c0_79 = arith.constant 0 : index
    %206 = vector.load %arg1[%205, %c0_79] : memref<64x32xf32, #tpu.memory_space<vmem>>, vector<8x32xf32>
    %207 = arith.index_cast %202 : i32 to index
    %c0_80 = arith.constant 0 : index
    %208 = vector.load %arg15[%207, %c0_80] : memref<64x64xf32, #tpu.memory_space<vmem>>, vector<8x64xf32>
    %209 = arith.index_cast %202 : i32 to index
    %c0_81 = arith.constant 0 : index
    %210 = vector.load %arg16[%209, %c0_81] : memref<64x64xf32, #tpu.memory_space<vmem>>, vector<8x64xf32>
    %211 = arith.index_cast %c5_i32 : i32 to index
    %c0_82 = arith.constant 0 : index
    %212 = vector.load %arg3[%211, %c0_82] : memref<8x32xf32, #tpu.memory_space<vmem>>, vector<1x32xf32>
    %213 = arith.mulf %198, %208 : vector<8x64xf32>
    %214 = arith.truncf %213 : vector<8x64xf32> to vector<8x64xbf16>
    %cst_83 = arith.constant dense<0.000000e+00> : vector<8x32xf32>
    %215 = tpu.matmul %214, %20, %cst_83 {dimension_numbers = #tpu.dot_dimension_numbers<[1], [0], [0], [1], [0, 0, 1, 1], [], []>} : vector<8x64xbf16>, vector<64x32xbf16>, vector<8x32xf32> -> vector<8x32xf32>
    %216 = vector.broadcast %21 : vector<1x32xf32> to vector<8x32xf32>
    %217 = arith.addf %215, %216 : vector<8x32xf32>
    %218 = arith.subf %204, %217 : vector<8x32xf32>
    %219 = math.absf %218 : vector<8x32xf32>
    %220 = arith.mulf %219, %206 : vector<8x32xf32>
    %221 = vector.broadcast %212 : vector<1x32xf32> to vector<8x32xf32>
    %222 = arith.mulf %220, %221 : vector<8x32xf32>
    %223 = arith.addf %188, %222 : vector<8x32xf32>
    %224 = arith.subf %204, %217 : vector<8x32xf32>
    %225 = arith.mulf %206, %224 : vector<8x32xf32>
    %226 = arith.addf %217, %225 : vector<8x32xf32>
    %227 = arith.truncf %226 : vector<8x32xf32> to vector<8x32xbf16>
    %cst_84 = arith.constant dense<0.000000e+00> : vector<8x64xf32>
    %228 = tpu.matmul %227, %22, %cst_84 {dimension_numbers = #tpu.dot_dimension_numbers<[1], [0], [0], [1], [0, 0, 1, 1], [], []>} : vector<8x32xbf16>, vector<32x64xbf16>, vector<8x64xf32> -> vector<8x64xf32>
    %229 = arith.truncf %213 : vector<8x64xf32> to vector<8x64xbf16>
    %cst_85 = arith.constant dense<0.000000e+00> : vector<8x64xf32>
    %230 = tpu.matmul %229, %23, %cst_85 {dimension_numbers = #tpu.dot_dimension_numbers<[1], [0], [0], [1], [0, 0, 1, 1], [], []>} : vector<8x64xbf16>, vector<64x64xbf16>, vector<8x64xf32> -> vector<8x64xf32>
    %231 = arith.addf %228, %230 : vector<8x64xf32>
    %232 = arith.addf %231, %210 : vector<8x64xf32>
    %233 = math.tanh %232 : vector<8x64xf32>
    %234 = arith.index_cast %202 : i32 to index
    %c0_86 = arith.constant 0 : index
    %235 = vector.load %arg17[%234, %c0_86] : memref<64x32xf32, #tpu.memory_space<vmem>>, vector<8x32xf32>
    tpu.vector_store %arg17[%234, %c0_86], %217 {strides = array<i32>} : memref<64x32xf32, #tpu.memory_space<vmem>>, vector<8x32xf32>,
    %c6_i32 = arith.constant 6 : i32
    %c8_i32_87 = arith.constant 8 : i32
    %236 = arith.muli %c6_i32, %c8_i32_87 : i32
    %237 = tpu.assume_multiple %236, 8 : i32
    %238 = arith.index_cast %237 : i32 to index
    %c0_88 = arith.constant 0 : index
    %239 = vector.load %arg0[%238, %c0_88] : memref<64x32xf32, #tpu.memory_space<vmem>>, vector<8x32xf32>
    %240 = arith.index_cast %237 : i32 to index
    %c0_89 = arith.constant 0 : index
    %241 = vector.load %arg1[%240, %c0_89] : memref<64x32xf32, #tpu.memory_space<vmem>>, vector<8x32xf32>
    %242 = arith.index_cast %237 : i32 to index
    %c0_90 = arith.constant 0 : index
    %243 = vector.load %arg15[%242, %c0_90] : memref<64x64xf32, #tpu.memory_space<vmem>>, vector<8x64xf32>
    %244 = arith.index_cast %237 : i32 to index
    %c0_91 = arith.constant 0 : index
    %245 = vector.load %arg16[%244, %c0_91] : memref<64x64xf32, #tpu.memory_space<vmem>>, vector<8x64xf32>
    %246 = arith.index_cast %c6_i32 : i32 to index
    %c0_92 = arith.constant 0 : index
    %247 = vector.load %arg3[%246, %c0_92] : memref<8x32xf32, #tpu.memory_space<vmem>>, vector<1x32xf32>
    %248 = arith.mulf %233, %243 : vector<8x64xf32>
    %249 = arith.truncf %248 : vector<8x64xf32> to vector<8x64xbf16>
    %cst_93 = arith.constant dense<0.000000e+00> : vector<8x32xf32>
    %250 = tpu.matmul %249, %20, %cst_93 {dimension_numbers = #tpu.dot_dimension_numbers<[1], [0], [0], [1], [0, 0, 1, 1], [], []>} : vector<8x64xbf16>, vector<64x32xbf16>, vector<8x32xf32> -> vector<8x32xf32>
    %251 = vector.broadcast %21 : vector<1x32xf32> to vector<8x32xf32>
    %252 = arith.addf %250, %251 : vector<8x32xf32>
    %253 = arith.subf %239, %252 : vector<8x32xf32>
    %254 = math.absf %253 : vector<8x32xf32>
    %255 = arith.mulf %254, %241 : vector<8x32xf32>
    %256 = vector.broadcast %247 : vector<1x32xf32> to vector<8x32xf32>
    %257 = arith.mulf %255, %256 : vector<8x32xf32>
    %258 = arith.addf %223, %257 : vector<8x32xf32>
    %259 = arith.subf %239, %252 : vector<8x32xf32>
    %260 = arith.mulf %241, %259 : vector<8x32xf32>
    %261 = arith.addf %252, %260 : vector<8x32xf32>
    %262 = arith.truncf %261 : vector<8x32xf32> to vector<8x32xbf16>
    %cst_94 = arith.constant dense<0.000000e+00> : vector<8x64xf32>
    %263 = tpu.matmul %262, %22, %cst_94 {dimension_numbers = #tpu.dot_dimension_numbers<[1], [0], [0], [1], [0, 0, 1, 1], [], []>} : vector<8x32xbf16>, vector<32x64xbf16>, vector<8x64xf32> -> vector<8x64xf32>
    %264 = arith.truncf %248 : vector<8x64xf32> to vector<8x64xbf16>
    %cst_95 = arith.constant dense<0.000000e+00> : vector<8x64xf32>
    %265 = tpu.matmul %264, %23, %cst_95 {dimension_numbers = #tpu.dot_dimension_numbers<[1], [0], [0], [1], [0, 0, 1, 1], [], []>} : vector<8x64xbf16>, vector<64x64xbf16>, vector<8x64xf32> -> vector<8x64xf32>
    %266 = arith.addf %263, %265 : vector<8x64xf32>
    %267 = arith.addf %266, %245 : vector<8x64xf32>
    %268 = math.tanh %267 : vector<8x64xf32>
    %269 = arith.index_cast %237 : i32 to index
    %c0_96 = arith.constant 0 : index
    %270 = vector.load %arg17[%269, %c0_96] : memref<64x32xf32, #tpu.memory_space<vmem>>, vector<8x32xf32>
    tpu.vector_store %arg17[%269, %c0_96], %252 {strides = array<i32>} : memref<64x32xf32, #tpu.memory_space<vmem>>, vector<8x32xf32>,
    %c7_i32 = arith.constant 7 : i32
    %c8_i32_97 = arith.constant 8 : i32
    %271 = arith.muli %c7_i32, %c8_i32_97 : i32
    %272 = tpu.assume_multiple %271, 8 : i32
    %273 = arith.index_cast %272 : i32 to index
    %c0_98 = arith.constant 0 : index
    %274 = vector.load %arg0[%273, %c0_98] : memref<64x32xf32, #tpu.memory_space<vmem>>, vector<8x32xf32>
    %275 = arith.index_cast %272 : i32 to index
    %c0_99 = arith.constant 0 : index
    %276 = vector.load %arg1[%275, %c0_99] : memref<64x32xf32, #tpu.memory_space<vmem>>, vector<8x32xf32>
    %277 = arith.index_cast %272 : i32 to index
    %c0_100 = arith.constant 0 : index
    %278 = vector.load %arg15[%277, %c0_100] : memref<64x64xf32, #tpu.memory_space<vmem>>, vector<8x64xf32>
    %279 = arith.index_cast %272 : i32 to index
    %c0_101 = arith.constant 0 : index
    %280 = vector.load %arg16[%279, %c0_101] : memref<64x64xf32, #tpu.memory_space<vmem>>, vector<8x64xf32>
    %281 = arith.index_cast %c7_i32 : i32 to index
    %c0_102 = arith.constant 0 : index
    %282 = vector.load %arg3[%281, %c0_102] : memref<8x32xf32, #tpu.memory_space<vmem>>, vector<1x32xf32>
    %283 = arith.mulf %268, %278 : vector<8x64xf32>
    %284 = arith.truncf %283 : vector<8x64xf32> to vector<8x64xbf16>
    %cst_103 = arith.constant dense<0.000000e+00> : vector<8x32xf32>
    %285 = tpu.matmul %284, %20, %cst_103 {dimension_numbers = #tpu.dot_dimension_numbers<[1], [0], [0], [1], [0, 0, 1, 1], [], []>} : vector<8x64xbf16>, vector<64x32xbf16>, vector<8x32xf32> -> vector<8x32xf32>
    %286 = vector.broadcast %21 : vector<1x32xf32> to vector<8x32xf32>
    %287 = arith.addf %285, %286 : vector<8x32xf32>
    %288 = arith.subf %274, %287 : vector<8x32xf32>
    %289 = math.absf %288 : vector<8x32xf32>
    %290 = arith.mulf %289, %276 : vector<8x32xf32>
    %291 = vector.broadcast %282 : vector<1x32xf32> to vector<8x32xf32>
    %292 = arith.mulf %290, %291 : vector<8x32xf32>
    %293 = arith.addf %258, %292 : vector<8x32xf32>
    %294 = arith.subf %274, %287 : vector<8x32xf32>
    %295 = arith.mulf %276, %294 : vector<8x32xf32>
    %296 = arith.addf %287, %295 : vector<8x32xf32>
    %297 = arith.truncf %296 : vector<8x32xf32> to vector<8x32xbf16>
    %cst_104 = arith.constant dense<0.000000e+00> : vector<8x64xf32>
    %298 = tpu.matmul %297, %22, %cst_104 {dimension_numbers = #tpu.dot_dimension_numbers<[1], [0], [0], [1], [0, 0, 1, 1], [], []>} : vector<8x32xbf16>, vector<32x64xbf16>, vector<8x64xf32> -> vector<8x64xf32>
    %299 = arith.truncf %283 : vector<8x64xf32> to vector<8x64xbf16>
    %cst_105 = arith.constant dense<0.000000e+00> : vector<8x64xf32>
    %300 = tpu.matmul %299, %23, %cst_105 {dimension_numbers = #tpu.dot_dimension_numbers<[1], [0], [0], [1], [0, 0, 1, 1], [], []>} : vector<8x64xbf16>, vector<64x64xbf16>, vector<8x64xf32> -> vector<8x64xf32>
    %301 = arith.addf %298, %300 : vector<8x64xf32>
    %302 = arith.addf %301, %280 : vector<8x64xf32>
    %303 = math.tanh %302 : vector<8x64xf32>
    %304 = arith.index_cast %272 : i32 to index
    %c0_106 = arith.constant 0 : index
    %305 = vector.load %arg17[%304, %c0_106] : memref<64x32xf32, #tpu.memory_space<vmem>>, vector<8x32xf32>
    tpu.vector_store %arg17[%304, %c0_106], %287 {strides = array<i32>} : memref<64x32xf32, #tpu.memory_space<vmem>>, vector<8x32xf32>,
    %c8_i32_107 = arith.constant 8 : i32
    %cst_108 = arith.constant 0.000000e+00 : f32
    %306 = vector.broadcast %cst_108 : f32 to vector<8x16xf32>
    %c0_109 = arith.constant 0 : index
    %c0_110 = arith.constant 0 : index
    %307 = vector.load %arg17[%c0_109, %c0_110] : memref<64x32xf32, #tpu.memory_space<vmem>>, vector<8x32xf32>
    %c56 = arith.constant 56 : index
    %c0_111 = arith.constant 0 : index
    %308 = vector.load %arg17[%c56, %c0_111] : memref<64x32xf32, #tpu.memory_space<vmem>>, vector<8x32xf32>
    %c0_112 = arith.constant 0 : index
    %c0_113 = arith.constant 0 : index
    %309 = vector.load %arg1[%c0_112, %c0_113] : memref<64x32xf32, #tpu.memory_space<vmem>>, vector<8x32xf32>
    %c0_114 = arith.constant 0 : index
    %c0_115 = arith.constant 0 : index
    %310 = vector.load %arg0[%c0_114, %c0_115] : memref<64x32xf32, #tpu.memory_space<vmem>>, vector<8x32xf32>
    %311 = arith.subf %310, %307 : vector<8x32xf32>
    %312 = arith.mulf %309, %311 : vector<8x32xf32>
    %313 = arith.addf %307, %312 : vector<8x32xf32>
    %c56_116 = arith.constant 56 : index
    %c0_117 = arith.constant 0 : index
    %314 = vector.load %arg1[%c56_116, %c0_117] : memref<64x32xf32, #tpu.memory_space<vmem>>, vector<8x32xf32>
    %c56_118 = arith.constant 56 : index
    %c0_119 = arith.constant 0 : index
    %315 = vector.load %arg0[%c56_118, %c0_119] : memref<64x32xf32, #tpu.memory_space<vmem>>, vector<8x32xf32>
    %316 = arith.subf %315, %308 : vector<8x32xf32>
    %317 = arith.mulf %314, %316 : vector<8x32xf32>
    %318 = arith.addf %308, %317 : vector<8x32xf32>
    %319 = vector.extract_strided_slice %313 {offsets = [0, 0], sizes = [8, 16], strides = [1, 1]} : vector<8x32xf32> to vector<8x16xf32>
    %320 = vector.extract_strided_slice %318 {offsets = [0, 16], sizes = [8, 16], strides = [1, 1]} : vector<8x32xf32> to vector<8x16xf32>
    %321 = arith.addf %319, %320 : vector<8x16xf32>
    %cst_120 = arith.constant 5.000000e-01 : f32
    %322 = vector.broadcast %cst_120 : f32 to vector<8x16xf32>
    %323 = arith.mulf %321, %322 : vector<8x16xf32>
    %c0_121 = arith.constant 0 : index
    %c0_122 = arith.constant 0 : index
    %324 = vector.load %arg12[%c0_121, %c0_122] : memref<64x16xf32, #tpu.memory_space<vmem>>, vector<8x16xf32>
    tpu.vector_store %arg12[%c0_121, %c0_122], %323 {strides = array<i32>} : memref<64x16xf32, #tpu.memory_space<vmem>>, vector<8x16xf32>,
    %325 = vector.extract_strided_slice %307 {offsets = [0, 0], sizes = [8, 16], strides = [1, 1]} : vector<8x32xf32> to vector<8x16xf32>
    %326 = vector.extract_strided_slice %308 {offsets = [0, 16], sizes = [8, 16], strides = [1, 1]} : vector<8x32xf32> to vector<8x16xf32>
    %327 = arith.addf %325, %326 : vector<8x16xf32>
    %cst_123 = arith.constant 5.000000e-01 : f32
    %328 = vector.broadcast %cst_123 : f32 to vector<8x16xf32>
    %329 = arith.mulf %327, %328 : vector<8x16xf32>
    %c0_124 = arith.constant 0 : index
    %c0_125 = arith.constant 0 : index
    %330 = vector.load %arg13[%c0_124, %c0_125] : memref<64x16xf32, #tpu.memory_space<vmem>>, vector<8x16xf32>
    tpu.vector_store %arg13[%c0_124, %c0_125], %329 {strides = array<i32>} : memref<64x16xf32, #tpu.memory_space<vmem>>, vector<8x16xf32>,
    %331 = arith.subf %319, %320 : vector<8x16xf32>
    %332 = math.absf %331 : vector<8x16xf32>
    %333 = arith.addf %306, %332 : vector<8x16xf32>
    %c8 = arith.constant 8 : index
    %c0_126 = arith.constant 0 : index
    %334 = vector.load %arg17[%c8, %c0_126] : memref<64x32xf32, #tpu.memory_space<vmem>>, vector<8x32xf32>
    %c48 = arith.constant 48 : index
    %c0_127 = arith.constant 0 : index
    %335 = vector.load %arg17[%c48, %c0_127] : memref<64x32xf32, #tpu.memory_space<vmem>>, vector<8x32xf32>
    %c8_128 = arith.constant 8 : index
    %c0_129 = arith.constant 0 : index
    %336 = vector.load %arg1[%c8_128, %c0_129] : memref<64x32xf32, #tpu.memory_space<vmem>>, vector<8x32xf32>
    %c8_130 = arith.constant 8 : index
    %c0_131 = arith.constant 0 : index
    %337 = vector.load %arg0[%c8_130, %c0_131] : memref<64x32xf32, #tpu.memory_space<vmem>>, vector<8x32xf32>
    %338 = arith.subf %337, %334 : vector<8x32xf32>
    %339 = arith.mulf %336, %338 : vector<8x32xf32>
    %340 = arith.addf %334, %339 : vector<8x32xf32>
    %c48_132 = arith.constant 48 : index
    %c0_133 = arith.constant 0 : index
    %341 = vector.load %arg1[%c48_132, %c0_133] : memref<64x32xf32, #tpu.memory_space<vmem>>, vector<8x32xf32>
    %c48_134 = arith.constant 48 : index
    %c0_135 = arith.constant 0 : index
    %342 = vector.load %arg0[%c48_134, %c0_135] : memref<64x32xf32, #tpu.memory_space<vmem>>, vector<8x32xf32>
    %343 = arith.subf %342, %335 : vector<8x32xf32>
    %344 = arith.mulf %341, %343 : vector<8x32xf32>
    %345 = arith.addf %335, %344 : vector<8x32xf32>
    %346 = vector.extract_strided_slice %340 {offsets = [0, 0], sizes = [8, 16], strides = [1, 1]} : vector<8x32xf32> to vector<8x16xf32>
    %347 = vector.extract_strided_slice %345 {offsets = [0, 16], sizes = [8, 16], strides = [1, 1]} : vector<8x32xf32> to vector<8x16xf32>
    %348 = arith.addf %346, %347 : vector<8x16xf32>
    %cst_136 = arith.constant 5.000000e-01 : f32
    %349 = vector.broadcast %cst_136 : f32 to vector<8x16xf32>
    %350 = arith.mulf %348, %349 : vector<8x16xf32>
    %c8_137 = arith.constant 8 : index
    %c0_138 = arith.constant 0 : index
    %351 = vector.load %arg12[%c8_137, %c0_138] : memref<64x16xf32, #tpu.memory_space<vmem>>, vector<8x16xf32>
    tpu.vector_store %arg12[%c8_137, %c0_138], %350 {strides = array<i32>} : memref<64x16xf32, #tpu.memory_space<vmem>>, vector<8x16xf32>,
    %352 = vector.extract_strided_slice %334 {offsets = [0, 0], sizes = [8, 16], strides = [1, 1]} : vector<8x32xf32> to vector<8x16xf32>
    %353 = vector.extract_strided_slice %335 {offsets = [0, 16], sizes = [8, 16], strides = [1, 1]} : vector<8x32xf32> to vector<8x16xf32>
    %354 = arith.addf %352, %353 : vector<8x16xf32>
    %cst_139 = arith.constant 5.000000e-01 : f32
    %355 = vector.broadcast %cst_139 : f32 to vector<8x16xf32>
    %356 = arith.mulf %354, %355 : vector<8x16xf32>
    %c8_140 = arith.constant 8 : index
    %c0_141 = arith.constant 0 : index
    %357 = vector.load %arg13[%c8_140, %c0_141] : memref<64x16xf32, #tpu.memory_space<vmem>>, vector<8x16xf32>
    tpu.vector_store %arg13[%c8_140, %c0_141], %356 {strides = array<i32>} : memref<64x16xf32, #tpu.memory_space<vmem>>, vector<8x16xf32>,
    %358 = arith.subf %346, %347 : vector<8x16xf32>
    %359 = math.absf %358 : vector<8x16xf32>
    %360 = arith.addf %333, %359 : vector<8x16xf32>
    %c16 = arith.constant 16 : index
    %c0_142 = arith.constant 0 : index
    %361 = vector.load %arg17[%c16, %c0_142] : memref<64x32xf32, #tpu.memory_space<vmem>>, vector<8x32xf32>
    %c40 = arith.constant 40 : index
    %c0_143 = arith.constant 0 : index
    %362 = vector.load %arg17[%c40, %c0_143] : memref<64x32xf32, #tpu.memory_space<vmem>>, vector<8x32xf32>
    %c16_144 = arith.constant 16 : index
    %c0_145 = arith.constant 0 : index
    %363 = vector.load %arg1[%c16_144, %c0_145] : memref<64x32xf32, #tpu.memory_space<vmem>>, vector<8x32xf32>
    %c16_146 = arith.constant 16 : index
    %c0_147 = arith.constant 0 : index
    %364 = vector.load %arg0[%c16_146, %c0_147] : memref<64x32xf32, #tpu.memory_space<vmem>>, vector<8x32xf32>
    %365 = arith.subf %364, %361 : vector<8x32xf32>
    %366 = arith.mulf %363, %365 : vector<8x32xf32>
    %367 = arith.addf %361, %366 : vector<8x32xf32>
    %c40_148 = arith.constant 40 : index
    %c0_149 = arith.constant 0 : index
    %368 = vector.load %arg1[%c40_148, %c0_149] : memref<64x32xf32, #tpu.memory_space<vmem>>, vector<8x32xf32>
    %c40_150 = arith.constant 40 : index
    %c0_151 = arith.constant 0 : index
    %369 = vector.load %arg0[%c40_150, %c0_151] : memref<64x32xf32, #tpu.memory_space<vmem>>, vector<8x32xf32>
    %370 = arith.subf %369, %362 : vector<8x32xf32>
    %371 = arith.mulf %368, %370 : vector<8x32xf32>
    %372 = arith.addf %362, %371 : vector<8x32xf32>
    %373 = vector.extract_strided_slice %367 {offsets = [0, 0], sizes = [8, 16], strides = [1, 1]} : vector<8x32xf32> to vector<8x16xf32>
    %374 = vector.extract_strided_slice %372 {offsets = [0, 16], sizes = [8, 16], strides = [1, 1]} : vector<8x32xf32> to vector<8x16xf32>
    %375 = arith.addf %373, %374 : vector<8x16xf32>
    %cst_152 = arith.constant 5.000000e-01 : f32
    %376 = vector.broadcast %cst_152 : f32 to vector<8x16xf32>
    %377 = arith.mulf %375, %376 : vector<8x16xf32>
    %c16_153 = arith.constant 16 : index
    %c0_154 = arith.constant 0 : index
    %378 = vector.load %arg12[%c16_153, %c0_154] : memref<64x16xf32, #tpu.memory_space<vmem>>, vector<8x16xf32>
    tpu.vector_store %arg12[%c16_153, %c0_154], %377 {strides = array<i32>} : memref<64x16xf32, #tpu.memory_space<vmem>>, vector<8x16xf32>,
    %379 = vector.extract_strided_slice %361 {offsets = [0, 0], sizes = [8, 16], strides = [1, 1]} : vector<8x32xf32> to vector<8x16xf32>
    %380 = vector.extract_strided_slice %362 {offsets = [0, 16], sizes = [8, 16], strides = [1, 1]} : vector<8x32xf32> to vector<8x16xf32>
    %381 = arith.addf %379, %380 : vector<8x16xf32>
    %cst_155 = arith.constant 5.000000e-01 : f32
    %382 = vector.broadcast %cst_155 : f32 to vector<8x16xf32>
    %383 = arith.mulf %381, %382 : vector<8x16xf32>
    %c16_156 = arith.constant 16 : index
    %c0_157 = arith.constant 0 : index
    %384 = vector.load %arg13[%c16_156, %c0_157] : memref<64x16xf32, #tpu.memory_space<vmem>>, vector<8x16xf32>
    tpu.vector_store %arg13[%c16_156, %c0_157], %383 {strides = array<i32>} : memref<64x16xf32, #tpu.memory_space<vmem>>, vector<8x16xf32>,
    %385 = arith.subf %373, %374 : vector<8x16xf32>
    %386 = math.absf %385 : vector<8x16xf32>
    %387 = arith.addf %360, %386 : vector<8x16xf32>
    %c24 = arith.constant 24 : index
    %c0_158 = arith.constant 0 : index
    %388 = vector.load %arg17[%c24, %c0_158] : memref<64x32xf32, #tpu.memory_space<vmem>>, vector<8x32xf32>
    %c32 = arith.constant 32 : index
    %c0_159 = arith.constant 0 : index
    %389 = vector.load %arg17[%c32, %c0_159] : memref<64x32xf32, #tpu.memory_space<vmem>>, vector<8x32xf32>
    %c24_160 = arith.constant 24 : index
    %c0_161 = arith.constant 0 : index
    %390 = vector.load %arg1[%c24_160, %c0_161] : memref<64x32xf32, #tpu.memory_space<vmem>>, vector<8x32xf32>
    %c24_162 = arith.constant 24 : index
    %c0_163 = arith.constant 0 : index
    %391 = vector.load %arg0[%c24_162, %c0_163] : memref<64x32xf32, #tpu.memory_space<vmem>>, vector<8x32xf32>
    %392 = arith.subf %391, %388 : vector<8x32xf32>
    %393 = arith.mulf %390, %392 : vector<8x32xf32>
    %394 = arith.addf %388, %393 : vector<8x32xf32>
    %c32_164 = arith.constant 32 : index
    %c0_165 = arith.constant 0 : index
    %395 = vector.load %arg1[%c32_164, %c0_165] : memref<64x32xf32, #tpu.memory_space<vmem>>, vector<8x32xf32>
    %c32_166 = arith.constant 32 : index
    %c0_167 = arith.constant 0 : index
    %396 = vector.load %arg0[%c32_166, %c0_167] : memref<64x32xf32, #tpu.memory_space<vmem>>, vector<8x32xf32>
    %397 = arith.subf %396, %389 : vector<8x32xf32>
    %398 = arith.mulf %395, %397 : vector<8x32xf32>
    %399 = arith.addf %389, %398 : vector<8x32xf32>
    %400 = vector.extract_strided_slice %394 {offsets = [0, 0], sizes = [8, 16], strides = [1, 1]} : vector<8x32xf32> to vector<8x16xf32>
    %401 = vector.extract_strided_slice %399 {offsets = [0, 16], sizes = [8, 16], strides = [1, 1]} : vector<8x32xf32> to vector<8x16xf32>
    %402 = arith.addf %400, %401 : vector<8x16xf32>
    %cst_168 = arith.constant 5.000000e-01 : f32
    %403 = vector.broadcast %cst_168 : f32 to vector<8x16xf32>
    %404 = arith.mulf %402, %403 : vector<8x16xf32>
    %c24_169 = arith.constant 24 : index
    %c0_170 = arith.constant 0 : index
    %405 = vector.load %arg12[%c24_169, %c0_170] : memref<64x16xf32, #tpu.memory_space<vmem>>, vector<8x16xf32>
    tpu.vector_store %arg12[%c24_169, %c0_170], %404 {strides = array<i32>} : memref<64x16xf32, #tpu.memory_space<vmem>>, vector<8x16xf32>,
    %406 = vector.extract_strided_slice %388 {offsets = [0, 0], sizes = [8, 16], strides = [1, 1]} : vector<8x32xf32> to vector<8x16xf32>
    %407 = vector.extract_strided_slice %389 {offsets = [0, 16], sizes = [8, 16], strides = [1, 1]} : vector<8x32xf32> to vector<8x16xf32>
    %408 = arith.addf %406, %407 : vector<8x16xf32>
    %cst_171 = arith.constant 5.000000e-01 : f32
    %409 = vector.broadcast %cst_171 : f32 to vector<8x16xf32>
    %410 = arith.mulf %408, %409 : vector<8x16xf32>
    %c24_172 = arith.constant 24 : index
    %c0_173 = arith.constant 0 : index
    %411 = vector.load %arg13[%c24_172, %c0_173] : memref<64x16xf32, #tpu.memory_space<vmem>>, vector<8x16xf32>
    tpu.vector_store %arg13[%c24_172, %c0_173], %410 {strides = array<i32>} : memref<64x16xf32, #tpu.memory_space<vmem>>, vector<8x16xf32>,
    %412 = arith.subf %400, %401 : vector<8x16xf32>
    %413 = math.absf %412 : vector<8x16xf32>
    %414 = arith.addf %387, %413 : vector<8x16xf32>
    %c32_174 = arith.constant 32 : index
    %c0_175 = arith.constant 0 : index
    %415 = vector.load %arg17[%c32_174, %c0_175] : memref<64x32xf32, #tpu.memory_space<vmem>>, vector<8x32xf32>
    %c24_176 = arith.constant 24 : index
    %c0_177 = arith.constant 0 : index
    %416 = vector.load %arg17[%c24_176, %c0_177] : memref<64x32xf32, #tpu.memory_space<vmem>>, vector<8x32xf32>
    %c32_178 = arith.constant 32 : index
    %c0_179 = arith.constant 0 : index
    %417 = vector.load %arg1[%c32_178, %c0_179] : memref<64x32xf32, #tpu.memory_space<vmem>>, vector<8x32xf32>
    %c32_180 = arith.constant 32 : index
    %c0_181 = arith.constant 0 : index
    %418 = vector.load %arg0[%c32_180, %c0_181] : memref<64x32xf32, #tpu.memory_space<vmem>>, vector<8x32xf32>
    %419 = arith.subf %418, %415 : vector<8x32xf32>
    %420 = arith.mulf %417, %419 : vector<8x32xf32>
    %421 = arith.addf %415, %420 : vector<8x32xf32>
    %c24_182 = arith.constant 24 : index
    %c0_183 = arith.constant 0 : index
    %422 = vector.load %arg1[%c24_182, %c0_183] : memref<64x32xf32, #tpu.memory_space<vmem>>, vector<8x32xf32>
    %c24_184 = arith.constant 24 : index
    %c0_185 = arith.constant 0 : index
    %423 = vector.load %arg0[%c24_184, %c0_185] : memref<64x32xf32, #tpu.memory_space<vmem>>, vector<8x32xf32>
    %424 = arith.subf %423, %416 : vector<8x32xf32>
    %425 = arith.mulf %422, %424 : vector<8x32xf32>
    %426 = arith.addf %416, %425 : vector<8x32xf32>
    %427 = vector.extract_strided_slice %421 {offsets = [0, 0], sizes = [8, 16], strides = [1, 1]} : vector<8x32xf32> to vector<8x16xf32>
    %428 = vector.extract_strided_slice %426 {offsets = [0, 16], sizes = [8, 16], strides = [1, 1]} : vector<8x32xf32> to vector<8x16xf32>
    %429 = arith.addf %427, %428 : vector<8x16xf32>
    %cst_186 = arith.constant 5.000000e-01 : f32
    %430 = vector.broadcast %cst_186 : f32 to vector<8x16xf32>
    %431 = arith.mulf %429, %430 : vector<8x16xf32>
    %c32_187 = arith.constant 32 : index
    %c0_188 = arith.constant 0 : index
    %432 = vector.load %arg12[%c32_187, %c0_188] : memref<64x16xf32, #tpu.memory_space<vmem>>, vector<8x16xf32>
    tpu.vector_store %arg12[%c32_187, %c0_188], %431 {strides = array<i32>} : memref<64x16xf32, #tpu.memory_space<vmem>>, vector<8x16xf32>,
    %433 = vector.extract_strided_slice %415 {offsets = [0, 0], sizes = [8, 16], strides = [1, 1]} : vector<8x32xf32> to vector<8x16xf32>
    %434 = vector.extract_strided_slice %416 {offsets = [0, 16], sizes = [8, 16], strides = [1, 1]} : vector<8x32xf32> to vector<8x16xf32>
    %435 = arith.addf %433, %434 : vector<8x16xf32>
    %cst_189 = arith.constant 5.000000e-01 : f32
    %436 = vector.broadcast %cst_189 : f32 to vector<8x16xf32>
    %437 = arith.mulf %435, %436 : vector<8x16xf32>
    %c32_190 = arith.constant 32 : index
    %c0_191 = arith.constant 0 : index
    %438 = vector.load %arg13[%c32_190, %c0_191] : memref<64x16xf32, #tpu.memory_space<vmem>>, vector<8x16xf32>
    tpu.vector_store %arg13[%c32_190, %c0_191], %437 {strides = array<i32>} : memref<64x16xf32, #tpu.memory_space<vmem>>, vector<8x16xf32>,
    %439 = arith.subf %427, %428 : vector<8x16xf32>
    %440 = math.absf %439 : vector<8x16xf32>
    %441 = arith.addf %414, %440 : vector<8x16xf32>
    %c40_192 = arith.constant 40 : index
    %c0_193 = arith.constant 0 : index
    %442 = vector.load %arg17[%c40_192, %c0_193] : memref<64x32xf32, #tpu.memory_space<vmem>>, vector<8x32xf32>
    %c16_194 = arith.constant 16 : index
    %c0_195 = arith.constant 0 : index
    %443 = vector.load %arg17[%c16_194, %c0_195] : memref<64x32xf32, #tpu.memory_space<vmem>>, vector<8x32xf32>
    %c40_196 = arith.constant 40 : index
    %c0_197 = arith.constant 0 : index
    %444 = vector.load %arg1[%c40_196, %c0_197] : memref<64x32xf32, #tpu.memory_space<vmem>>, vector<8x32xf32>
    %c40_198 = arith.constant 40 : index
    %c0_199 = arith.constant 0 : index
    %445 = vector.load %arg0[%c40_198, %c0_199] : memref<64x32xf32, #tpu.memory_space<vmem>>, vector<8x32xf32>
    %446 = arith.subf %445, %442 : vector<8x32xf32>
    %447 = arith.mulf %444, %446 : vector<8x32xf32>
    %448 = arith.addf %442, %447 : vector<8x32xf32>
    %c16_200 = arith.constant 16 : index
    %c0_201 = arith.constant 0 : index
    %449 = vector.load %arg1[%c16_200, %c0_201] : memref<64x32xf32, #tpu.memory_space<vmem>>, vector<8x32xf32>
    %c16_202 = arith.constant 16 : index
    %c0_203 = arith.constant 0 : index
    %450 = vector.load %arg0[%c16_202, %c0_203] : memref<64x32xf32, #tpu.memory_space<vmem>>, vector<8x32xf32>
    %451 = arith.subf %450, %443 : vector<8x32xf32>
    %452 = arith.mulf %449, %451 : vector<8x32xf32>
    %453 = arith.addf %443, %452 : vector<8x32xf32>
    %454 = vector.extract_strided_slice %448 {offsets = [0, 0], sizes = [8, 16], strides = [1, 1]} : vector<8x32xf32> to vector<8x16xf32>
    %455 = vector.extract_strided_slice %453 {offsets = [0, 16], sizes = [8, 16], strides = [1, 1]} : vector<8x32xf32> to vector<8x16xf32>
    %456 = arith.addf %454, %455 : vector<8x16xf32>
    %cst_204 = arith.constant 5.000000e-01 : f32
    %457 = vector.broadcast %cst_204 : f32 to vector<8x16xf32>
    %458 = arith.mulf %456, %457 : vector<8x16xf32>
    %c40_205 = arith.constant 40 : index
    %c0_206 = arith.constant 0 : index
    %459 = vector.load %arg12[%c40_205, %c0_206] : memref<64x16xf32, #tpu.memory_space<vmem>>, vector<8x16xf32>
    tpu.vector_store %arg12[%c40_205, %c0_206], %458 {strides = array<i32>} : memref<64x16xf32, #tpu.memory_space<vmem>>, vector<8x16xf32>,
    %460 = vector.extract_strided_slice %442 {offsets = [0, 0], sizes = [8, 16], strides = [1, 1]} : vector<8x32xf32> to vector<8x16xf32>
    %461 = vector.extract_strided_slice %443 {offsets = [0, 16], sizes = [8, 16], strides = [1, 1]} : vector<8x32xf32> to vector<8x16xf32>
    %462 = arith.addf %460, %461 : vector<8x16xf32>
    %cst_207 = arith.constant 5.000000e-01 : f32
    %463 = vector.broadcast %cst_207 : f32 to vector<8x16xf32>
    %464 = arith.mulf %462, %463 : vector<8x16xf32>
    %c40_208 = arith.constant 40 : index
    %c0_209 = arith.constant 0 : index
    %465 = vector.load %arg13[%c40_208, %c0_209] : memref<64x16xf32, #tpu.memory_space<vmem>>, vector<8x16xf32>
    tpu.vector_store %arg13[%c40_208, %c0_209], %464 {strides = array<i32>} : memref<64x16xf32, #tpu.memory_space<vmem>>, vector<8x16xf32>,
    %466 = arith.subf %454, %455 : vector<8x16xf32>
    %467 = math.absf %466 : vector<8x16xf32>
    %468 = arith.addf %441, %467 : vector<8x16xf32>
    %c48_210 = arith.constant 48 : index
    %c0_211 = arith.constant 0 : index
    %469 = vector.load %arg17[%c48_210, %c0_211] : memref<64x32xf32, #tpu.memory_space<vmem>>, vector<8x32xf32>
    %c8_212 = arith.constant 8 : index
    %c0_213 = arith.constant 0 : index
    %470 = vector.load %arg17[%c8_212, %c0_213] : memref<64x32xf32, #tpu.memory_space<vmem>>, vector<8x32xf32>
    %c48_214 = arith.constant 48 : index
    %c0_215 = arith.constant 0 : index
    %471 = vector.load %arg1[%c48_214, %c0_215] : memref<64x32xf32, #tpu.memory_space<vmem>>, vector<8x32xf32>
    %c48_216 = arith.constant 48 : index
    %c0_217 = arith.constant 0 : index
    %472 = vector.load %arg0[%c48_216, %c0_217] : memref<64x32xf32, #tpu.memory_space<vmem>>, vector<8x32xf32>
    %473 = arith.subf %472, %469 : vector<8x32xf32>
    %474 = arith.mulf %471, %473 : vector<8x32xf32>
    %475 = arith.addf %469, %474 : vector<8x32xf32>
    %c8_218 = arith.constant 8 : index
    %c0_219 = arith.constant 0 : index
    %476 = vector.load %arg1[%c8_218, %c0_219] : memref<64x32xf32, #tpu.memory_space<vmem>>, vector<8x32xf32>
    %c8_220 = arith.constant 8 : index
    %c0_221 = arith.constant 0 : index
    %477 = vector.load %arg0[%c8_220, %c0_221] : memref<64x32xf32, #tpu.memory_space<vmem>>, vector<8x32xf32>
    %478 = arith.subf %477, %470 : vector<8x32xf32>
    %479 = arith.mulf %476, %478 : vector<8x32xf32>
    %480 = arith.addf %470, %479 : vector<8x32xf32>
    %481 = vector.extract_strided_slice %475 {offsets = [0, 0], sizes = [8, 16], strides = [1, 1]} : vector<8x32xf32> to vector<8x16xf32>
    %482 = vector.extract_strided_slice %480 {offsets = [0, 16], sizes = [8, 16], strides = [1, 1]} : vector<8x32xf32> to vector<8x16xf32>
    %483 = arith.addf %481, %482 : vector<8x16xf32>
    %cst_222 = arith.constant 5.000000e-01 : f32
    %484 = vector.broadcast %cst_222 : f32 to vector<8x16xf32>
    %485 = arith.mulf %483, %484 : vector<8x16xf32>
    %c48_223 = arith.constant 48 : index
    %c0_224 = arith.constant 0 : index
    %486 = vector.load %arg12[%c48_223, %c0_224] : memref<64x16xf32, #tpu.memory_space<vmem>>, vector<8x16xf32>
    tpu.vector_store %arg12[%c48_223, %c0_224], %485 {strides = array<i32>} : memref<64x16xf32, #tpu.memory_space<vmem>>, vector<8x16xf32>,
    %487 = vector.extract_strided_slice %469 {offsets = [0, 0], sizes = [8, 16], strides = [1, 1]} : vector<8x32xf32> to vector<8x16xf32>
    %488 = vector.extract_strided_slice %470 {offsets = [0, 16], sizes = [8, 16], strides = [1, 1]} : vector<8x32xf32> to vector<8x16xf32>
    %489 = arith.addf %487, %488 : vector<8x16xf32>
    %cst_225 = arith.constant 5.000000e-01 : f32
    %490 = vector.broadcast %cst_225 : f32 to vector<8x16xf32>
    %491 = arith.mulf %489, %490 : vector<8x16xf32>
    %c48_226 = arith.constant 48 : index
    %c0_227 = arith.constant 0 : index
    %492 = vector.load %arg13[%c48_226, %c0_227] : memref<64x16xf32, #tpu.memory_space<vmem>>, vector<8x16xf32>
    tpu.vector_store %arg13[%c48_226, %c0_227], %491 {strides = array<i32>} : memref<64x16xf32, #tpu.memory_space<vmem>>, vector<8x16xf32>,
    %493 = arith.subf %481, %482 : vector<8x16xf32>
    %494 = math.absf %493 : vector<8x16xf32>
    %495 = arith.addf %468, %494 : vector<8x16xf32>
    %c56_228 = arith.constant 56 : index
    %c0_229 = arith.constant 0 : index
    %496 = vector.load %arg17[%c56_228, %c0_229] : memref<64x32xf32, #tpu.memory_space<vmem>>, vector<8x32xf32>
    %c0_230 = arith.constant 0 : index
    %c0_231 = arith.constant 0 : index
    %497 = vector.load %arg17[%c0_230, %c0_231] : memref<64x32xf32, #tpu.memory_space<vmem>>, vector<8x32xf32>
    %c56_232 = arith.constant 56 : index
    %c0_233 = arith.constant 0 : index
    %498 = vector.load %arg1[%c56_232, %c0_233] : memref<64x32xf32, #tpu.memory_space<vmem>>, vector<8x32xf32>
    %c56_234 = arith.constant 56 : index
    %c0_235 = arith.constant 0 : index
    %499 = vector.load %arg0[%c56_234, %c0_235] : memref<64x32xf32, #tpu.memory_space<vmem>>, vector<8x32xf32>
    %500 = arith.subf %499, %496 : vector<8x32xf32>
    %501 = arith.mulf %498, %500 : vector<8x32xf32>
    %502 = arith.addf %496, %501 : vector<8x32xf32>
    %c0_236 = arith.constant 0 : index
    %c0_237 = arith.constant 0 : index
    %503 = vector.load %arg1[%c0_236, %c0_237] : memref<64x32xf32, #tpu.memory_space<vmem>>, vector<8x32xf32>
    %c0_238 = arith.constant 0 : index
    %c0_239 = arith.constant 0 : index
    %504 = vector.load %arg0[%c0_238, %c0_239] : memref<64x32xf32, #tpu.memory_space<vmem>>, vector<8x32xf32>
    %505 = arith.subf %504, %497 : vector<8x32xf32>
    %506 = arith.mulf %503, %505 : vector<8x32xf32>
    %507 = arith.addf %497, %506 : vector<8x32xf32>
    %508 = vector.extract_strided_slice %502 {offsets = [0, 0], sizes = [8, 16], strides = [1, 1]} : vector<8x32xf32> to vector<8x16xf32>
    %509 = vector.extract_strided_slice %507 {offsets = [0, 16], sizes = [8, 16], strides = [1, 1]} : vector<8x32xf32> to vector<8x16xf32>
    %510 = arith.addf %508, %509 : vector<8x16xf32>
    %cst_240 = arith.constant 5.000000e-01 : f32
    %511 = vector.broadcast %cst_240 : f32 to vector<8x16xf32>
    %512 = arith.mulf %510, %511 : vector<8x16xf32>
    %c56_241 = arith.constant 56 : index
    %c0_242 = arith.constant 0 : index
    %513 = vector.load %arg12[%c56_241, %c0_242] : memref<64x16xf32, #tpu.memory_space<vmem>>, vector<8x16xf32>
    tpu.vector_store %arg12[%c56_241, %c0_242], %512 {strides = array<i32>} : memref<64x16xf32, #tpu.memory_space<vmem>>, vector<8x16xf32>,
    %514 = vector.extract_strided_slice %496 {offsets = [0, 0], sizes = [8, 16], strides = [1, 1]} : vector<8x32xf32> to vector<8x16xf32>
    %515 = vector.extract_strided_slice %497 {offsets = [0, 16], sizes = [8, 16], strides = [1, 1]} : vector<8x32xf32> to vector<8x16xf32>
    %516 = arith.addf %514, %515 : vector<8x16xf32>
    %cst_243 = arith.constant 5.000000e-01 : f32
    %517 = vector.broadcast %cst_243 : f32 to vector<8x16xf32>
    %518 = arith.mulf %516, %517 : vector<8x16xf32>
    %c56_244 = arith.constant 56 : index
    %c0_245 = arith.constant 0 : index
    %519 = vector.load %arg13[%c56_244, %c0_245] : memref<64x16xf32, #tpu.memory_space<vmem>>, vector<8x16xf32>
    tpu.vector_store %arg13[%c56_244, %c0_245], %518 {strides = array<i32>} : memref<64x16xf32, #tpu.memory_space<vmem>>, vector<8x16xf32>,
    %520 = arith.subf %508, %509 : vector<8x16xf32>
    %521 = math.absf %520 : vector<8x16xf32>
    %522 = arith.addf %495, %521 : vector<8x16xf32>
    %523 = vector.shape_cast %293 : vector<8x32xf32> to vector<1x8x32xf32>
    %cst_246 = arith.constant dense<0.000000e+00> : vector<1xf32>
    %524 = vector.multi_reduction <add>, %523, %cst_246 [1, 2] : vector<1x8x32xf32> to vector<1xf32>
    %525 = vector.shape_cast %524 : vector<1xf32> to vector<1x1x1xf32>
    %526 = vector.extract %525[0, 0, 0] : f32 from vector<1x1x1xf32>
    %527 = vector.shape_cast %522 : vector<8x16xf32> to vector<1x8x16xf32>
    %cst_247 = arith.constant dense<0.000000e+00> : vector<1xf32>
    %528 = vector.multi_reduction <add>, %527, %cst_247 [1, 2] : vector<1x8x16xf32> to vector<1xf32>
    %529 = vector.shape_cast %528 : vector<1xf32> to vector<1x1x1xf32>
    %530 = vector.extract %529[0, 0, 0] : f32 from vector<1x1x1xf32>
    %cst_248 = arith.constant 9.76562514E-5 : f32
    %531 = arith.mulf %530, %cst_248 : f32
    %532 = arith.addf %526, %531 : f32
    %c0_249 = arith.constant 0 : index
    %c0_250 = arith.constant 0 : index
    %533 = memref.load %arg14[%c0_249, %c0_250] : memref<1x1xf32, #tpu.memory_space<smem>>
    memref.store %532, %arg14[%c0_249, %c0_250] : memref<1x1xf32, #tpu.memory_space<smem>>
    return
  }
}

</mosaic_0001>

<bundles_post_ra>
// kernel: birnn_forward.1
= control target key start
LH: loop header
LB: loop body
LE: loop exit
PB: predicated region body
PF: predicated region fallthrough
CT: control target
= control target key end

     0   :  { %vm97_vm0 = vcmask 261120   ;;  %s3116_s0 = inlined_call_operand.vmem [shape: f32[64,32], index: 0, kind: input, shape index: {}]   ;;  %s3117_s1 = inlined_call_operand.vmem [shape: f32[64,32], index: 1, kind: input, shape index: {}]   ;;  %s3118_s2 = inlined_call_operand.vmem [shape: bf16[64,32], index: 2, kind: input, shape index: {}]   ;;  %s3119_s3 = inlined_call_operand.vmem [shape: f32[8,32], index: 3, kind: input, shape index: {}]   ;;  %s3120_s4 = inlined_call_operand.vmem [shape: bf16[32,64], index: 4, kind: input, shape index: {}]   ;;  %s3121_s5 = inlined_call_operand.vmem [shape: f32[1,64], index: 5, kind: input, shape index: {}]   ;;  %s3122_s6 = inlined_call_operand.vmem [shape: bf16[64,32], index: 6, kind: input, shape index: {}]   ;;  %s3123_s7 = inlined_call_operand.vmem [shape: f32[1,32], index: 7, kind: input, shape index: {}]   ;;  %s3124_s8 = inlined_call_operand.vmem [shape: bf16[32,64], index: 8, kind: input, shape index: {}]   ;;  %s3125_s9 = inlined_call_operand.vmem [shape: bf16[32,64], index: 9, kind: input, shape index: {}]   ;;  %s3126_s10 = inlined_call_operand.vmem [shape: bf16[64,64], index: 10, kind: input, shape index: {}]   ;;  %s3127_s11 = inlined_call_operand.vmem [shape: f32[1,64], index: 11, kind: input, shape index: {}]   ;;  %s3128_s12 = inlined_call_operand.vmem [shape: f32[64,16], index: 12, kind: output, shape index: {0}]   ;;  %s3129_s13 = inlined_call_operand.vmem [shape: f32[64,16], index: 13, kind: output, shape index: {1}]   ;;  %s3130_s14 = inlined_call_operand.hbm [shape: f32[1,1], index: 14, kind: output, shape index: {2}]  }
   0x1   :  { %v2279_v0 = vld [vmem:[%s3120_s4 + $0x8] sm:$0xff]   ;;  %v2280_v1 = vld [vmem:[%s3120_s4] sm:$0xff]  }
   0x2   :  { %2011 = vmatprep.subr.bf16.mxu0 %v2279_v0  ;;  %v2281_v2 = vld [vmem:[%s3118_s2] sm:$0xff]   ;;  %v2282_v3 = vld [vmem:[%s3118_s2 + $0x8] sm:$0xff]  }
   0x3   :  { %2012 = vmatpush3.bf16.msra.mxu0 %v2279_v0  ;;  %2015 = vmatprep.mubr.msk.bf16.mxu0 %vm97_vm0, %v2281_v2 }
   0x4   :  { %2013 = vmatprep.subr.bf16.mxu0 %v2280_v1 }
   0x7   :  { %2014 = vmatpush3.bf16.msra.mxu0 %v2280_v1 }
   0xa   :  { %2016 = vmatmul.mubr.msk.bf16.vlgmr.msra.gmra.mxu0 %vm97_vm0, %v2282_v3 }
   0xb   :  { %20 = vsyncpa [#allocation6], 0  ;;  %v2283_v4 = vld [vmem:[%s3125_s9 + $0x8] sm:$0xff]   ;;  %v2284_v5 = vld [vmem:[%s3125_s9] sm:$0xff]   ;;  %v2340_v15 = vmov 0.0   ;;  %vm2341_vm1 = vmmov 0  }
   0xc   :  { %2023 = vmatprep.subr.bf16.mxu1 %v2283_v4  ;;  %v2442_v6 = vld [vmem:[%s3117_s1] sm:$0xff]  ;;  %v2447_v7 = vld [vmem:[%s3117_s1 + $0x8] sm:$0xff]  ;;  %v2454_v9 = vld [vmem:[%s3117_s1 + $0x10] sm:$0xff]  ;;  %2035 = vmatprep.subr.bf16.mxu0 %v2340_v15  ;;  %vm207_vm2 = vcmask 523264   ;;  %vm1570_vm3 = vcmask 130048   ;;  %s2343_s21 = smov [#allocation5]  }
   0xd   :  { %2024 = vmatpush3.bf16.msra.mxu1 %v2283_v4  ;;  %v224_v8 = vpack.c.bf16 %v2447_v7, %v2442_v6  ;;  %v2459_v10 = vld [vmem:[%s3117_s1 + $0x18] sm:$0xff]  ;;  %v2286_v13 = vld [vmem:[%s3118_s2 + $0x10] sm:$0xff]   ;;  %v2502_v19 = vld [vmem:[%s3117_s1 + $0x20] sm:$0xff] }
   0xe   :  { %2025 = vmatprep.subr.bf16.mxu1 %v2284_v5  ;;  %v225_v11 = vpack.c.bf16 %v2459_v10, %v2454_v9  ;;  %v2467_v12 = vld [vmem:[%s3122_s6 + $0x18] sm:$0xff]   ;;  %2019 = vmatprep.mubr.msk.bf16.mxu0 %vm97_vm0, %v2286_v13  ;;  %v2491_v17 = vld [vmem:[%s3122_s6 + $0x10] sm:$0xff]   ;;  %v2507_v20 = vld [vmem:[%s3117_s1 + $0x28] sm:$0xff] }
   0xf   :  { %2027 = vmatprep.mubr.msk.bf16.mxu1 %vm97_vm0, %v224_v8  ;;  %v2475_v14 = vld [vmem:[%s3126_s10 + $0x18] sm:$0xff]   ;;  %2036 = vmatpush3.bf16.msra.mxu0 %v2467_v12  ;;  %v2496_v18 = vld [vmem:[%s3126_s10 + $0x10] sm:$0xff]   ;;  %v226_v21 = vpack.c.bf16 %v2507_v20, %v2502_v19  ;;  %v2524_v25 = vld [vmem:[%s3122_s6 + $0x8] sm:$0xff]  }
  0x10   :  { %v2288_v16 = vld [vmem:[%s3118_s2 + $0x18] sm:$0xff]   ;;  %2037 = vmatprep.subr.bf16.mxu0 %v2340_v15  ;;  %v222_v22 = vld [vmem:[%s3117_s1 + $0x30] sm:$0xff]  ;;  %v2530_v26 = vld [vmem:[%s3126_s10 + $0x8] sm:$0xff]  }
  0x11   :  { %2026 = vmatpush3.bf16.msra.mxu1 %v2284_v5  ;;  %v223_v23 = vld [vmem:[%s3117_s1 + $0x38] sm:$0xff]  ;;  %v2537_v27 = vld [vmem:[%s3122_s6] sm:$0xff]  }
  0x12   :  { %2047 = vmatprep.subr.bf16.mxu1 %v2340_v15  ;;  %2020 = vmatmul.mubr.msk.bf16.gmra.mxu0 %vm97_vm0, %v2288_v16  ;;  %v227_v24 = vpack.c.bf16 %v223_v23, %v222_v22  ;;  %v2546_v28 = vld [vmem:[%s3126_s10] sm:$0xff]  }
  0x13   :  { %2038 = vmatpush3.bf16.msra.mxu0 %v2491_v17  ;;  %2043 = vmatprep.mubr.msk.bf16.mxu0 %vm2341_vm1, %v2340_v15  ;;  %v2558_v29 = vld [vmem:[%s3121_s5] ss:$0 sm:$0xff] }
  0x14   :  { %2028 = vmatmul.mubr.msk.bf16.vlgmr.msra.gmra.mxu1 %vm97_vm0, %v225_v11  ;;  %2039 = vmatprep.subr.bf16.mxu0 %v2340_v15  ;;  %v1841_v57 = vld [vmem:[%s3127_s11] ss:$0 sm:$0xff] }
  0x15   :  { %2048 = vmatpush3.bf16.msra.mxu1 %v2475_v14  ;;  %2031 = vmatprep.mubr.msk.bf16.mxu1 %vm97_vm0, %v226_v21 }
  0x16   :  { %2049 = vmatprep.subr.bf16.mxu1 %v2340_v15 }
  0x17   :  { %2040 = vmatpush3.bf16.msra.mxu0 %v2524_v25 }
  0x18   :  { %2041 = vmatprep.subr.bf16.mxu0 %v2340_v15 }
  0x19   :  { %2050 = vmatpush3.bf16.msra.mxu1 %v2496_v18 }
  0x1a   :  { %2051 = vmatprep.subr.bf16.mxu1 %v2340_v15 }
  0x1b   :  { %2042 = vmatpush3.bf16.msra.mxu0 %v2537_v27 }
  0x1c   :  { %2032 = vmatmul.mubr.msk.bf16.gmra.mxu1 %vm97_vm0, %v227_v24  ;;  %2059 = vmatprep.subr.bf16.mxu0 %v2340_v15 }
  0x1d   :  { %2052 = vmatpush3.bf16.msra.mxu1 %v2530_v26  ;;  %2055 = vmatprep.mubr.msk.bf16.mxu1 %vm2341_vm1, %v2340_v15 }
  0x1e   :  { %2053 = vmatprep.subr.bf16.mxu1 %v2340_v15 }
  0x21   :  { %2054 = vmatpush3.bf16.msra.mxu1 %v2546_v28 }
  0x22   :  { %2067 = vmatprep.subr.bf16.mxu1 %v2340_v15 }
  0xca   :  { %v2017_v30 = vpop.f32.mrf.mxu0 }
  0xcb   :  { %v153_v31 = vadd.f32 %v2017_v30, %v2558_v29 }
  0xcc   :  { %v144_v32 = vpop.f32.mrf.mxu0 }
  0xcd   :  { %v177_v33 = vmax.f32 %v153_v31, 0.0  ;;  %v145_v34 = vadd.f32 %v2558_v29, %v144_v32 }
  0xce   :  { %v2018_v35 = vpop.f32.mrf.mxu0 }
  0xcf   :  { %v185_v36 = vsub.f32 0.0, %v177_v33  ;;  %v175_v37 = vmax.f32 %v145_v34, 0.0  ;;  %v156_v38 = vadd.f32 %v2018_v35, %v2558_v29 }
  0xd0   :  { %v147_v39 = vpop.f32.mrf.mxu0 }
  0xd1   :  { %v195_v40 = vmul.f32 1.442695, %v185_v36  ;;  %v183_v41 = vsub.f32 0.0, %v175_v37  ;;  %v178_v42 = vmax.f32 %v156_v38, 0.0  ;;  %v148_v43 = vadd.f32 %v2558_v29, %v147_v39 }
  0xd2   :  { %v2021_v61 = vpop.f32.mrf.mxu0 }
  0xd3   :  { %2297 = vpow2.f32 %v195_v40  ;;  %v191_v44 = vmul.f32 1.442695, %v183_v41  ;;  %v186_v45 = vsub.f32 0.0, %v178_v42  ;;  %v176_v46 = vmax.f32 %v148_v43, 0.0 }
  0xd4   :  { %v2029_v58 = vpop.f32.mrf.mxu1  ;;  %v169_v63 = vadd.f32 %v2021_v61, %v2558_v29  ;;  %v160_v1 = vpop.f32.mrf.mxu0 }
  0xd5   :  { %2299 = vpow2.f32 %v191_v44  ;;  %v197_v47 = vmul.f32 1.442695, %v186_v45  ;;  %v184_v48 = vsub.f32 0.0, %v176_v46  ;;  %v306_v59 = vadd.f32 %v2029_v58, %v1841_v57  ;;  %v2606_v45 = vld [vmem:[%s3124_s8] sm:$0xff]  }
  0xd6   :  { %v297_v60 = vpop.f32.mrf.mxu1  ;;  %v181_v3 = vmax.f32 %v169_v63, 0.0  ;;  %v161_v4 = vadd.f32 %v2558_v29, %v160_v1  ;;  %v2022_v8 = vpop.f32.mrf.mxu0 }
  0xd7   :  { %2301 = vpow2.f32 %v197_v47  ;;  %v193_v49 = vmul.f32 1.442695, %v184_v48  ;;  %330 = vst.msk [vmem:[#allocation3 + $0x10] sm:$0xff] %vm207_vm2, %v306_v59  ;;  %v298_v62 = vadd.f32 %v1841_v57, %v297_v60  ;;  %v172_v21 = vadd.f32 %v2022_v8, %v2558_v29 }
  0xd8   :  { %v2030_v0 = vpop.f32.mrf.mxu1  ;;  %v189_v13 = vsub.f32 0.0, %v181_v3  ;;  %v179_v16 = vmax.f32 %v161_v4, 0.0  ;;  %v163_v23 = vpop.f32.mrf.mxu0 }
  0xd9   :  { %2303 = vpow2.f32 %v193_v49  ;;  %328 = vst.msk [vmem:[#allocation3] sm:$0xff] %vm207_vm2, %v298_v62  ;;  %v309_v2 = vadd.f32 %v2030_v0, %v1841_v57  ;;  %v182_v32 = vmax.f32 %v172_v21, 0.0  ;;  %v164_v33 = vadd.f32 %v2558_v29, %v163_v23  ;;  %v2599_v29 = vld [vmem:[%s3124_s8 + $0x8] sm:$0xff]   ;;  %s2342_s8 = smov 112  }
  0xda   :  { %v300_v5 = vpop.f32.mrf.mxu1  ;;  %v203_v30 = vmul.f32 1.442695, %v189_v13  ;;  %v187_v31 = vsub.f32 0.0, %v179_v16  ;;  %v2660_v23 = vld [vmem:[%s3116_s0 + $0x8] sm:$0xff] }
  0xdb   :  { %331 = vst.msk [vmem:[#allocation3 + $0x18] sm:$0xff] %vm207_vm2, %v309_v2  ;;  %v301_v11 = vadd.f32 %v1841_v57, %v300_v5  ;;  %v190_v37 = vsub.f32 0.0, %v182_v32  ;;  %v180_v38 = vmax.f32 %v164_v33, 0.0 }
  0xdc   :  { %v2033_v22 = vpop.f32.mrf.mxu1  ;;  %2305 = vpow2.f32 %v203_v30  ;;  %v199_v36 = vmul.f32 1.442695, %v187_v31 }
  0xdd   :  { %329 = vst.msk [vmem:[#allocation3 + $0x8] sm:$0xff] %vm207_vm2, %v301_v11  ;;  %v322_v24 = vadd.f32 %v2033_v22, %v1841_v57  ;;  %v205_v40 = vmul.f32 1.442695, %v190_v37  ;;  %v188_v41 = vsub.f32 0.0, %v180_v38 }
  0xde   :  { %v313_v34 = vpop.f32.mrf.mxu1  ;;  %2307 = vpow2.f32 %v199_v36 }
  0xdf   :  { %334 = vst.msk [vmem:[#allocation3 + $0x30] sm:$0xff] %vm207_vm2, %v322_v24  ;;  %v314_v35 = vadd.f32 %v1841_v57, %v313_v34  ;;  %2309 = vpow2.f32 %v205_v40  ;;  %v201_v44 = vmul.f32 1.442695, %v188_v41  ;;  %v1854_v41 = vld [vmem:[%s3119_s3] ss:$0 sm:$0xff] }
  0xe0   :  { %v2298_v50 = vpop.eup %2297  ;;  %v2034_v39 = vpop.f32.mrf.mxu1  ;;  %v360_v3 = vld [vmem:[#allocation3] sm:$0xff] }
  0xe1   :  { %210 = vst.msk [vmem:[#allocation2 + $0x10] sm:$0xff] %vm207_vm2, %v2298_v50  ;;  %332 = vst.msk [vmem:[#allocation3 + $0x20] sm:$0xff] %vm207_vm2, %v314_v35  ;;  %2311 = vpow2.f32 %v201_v44  ;;  %v2617_v50 = vld [vmem:[%s3123_s7] ss:$0 sm:$0xff] }
  0xe2   :  { %v2300_v51 = vpop.eup %2299  ;;  %v316_v42 = vpop.f32.mrf.mxu1 }
  0xe3   :  { %208 = vst.msk [vmem:[#allocation2] sm:$0xff] %vm207_vm2, %v2300_v51  ;;  %v317_v43 = vadd.f32 %v1841_v57, %v316_v42  ;;  %v2622_v51 = vld [vmem:[%s3116_s0] sm:$0xff] }
  0xe4   :  { %v2302_v52 = vpop.eup %2301  ;;  %v1866_v42 = vld [vmem:[%s3119_s3 + $0x1] ss:$0 sm:$0xff] }
  0xe5   :  { %211 = vst.msk [vmem:[#allocation2 + $0x18] sm:$0xff] %vm207_vm2, %v2302_v52  ;;  %333 = vst.msk [vmem:[#allocation3 + $0x28] sm:$0xff] %vm207_vm2, %v317_v43 }
  0xe6   :  { %v2304_v53 = vpop.eup %2303 }
  0xe7   :  { %209 = vst.msk [vmem:[#allocation2 + $0x8] sm:$0xff] %vm207_vm2, %v2304_v53 }
  0xe9   :  { %v2306_v46 = vpop.eup %2305 }
  0xea   :  { %v359_v54 = vld [vmem:[#allocation2] sm:$0xff]  ;;  %214 = vst.msk [vmem:[#allocation2 + $0x30] sm:$0xff] %vm207_vm2, %v2306_v46 }
  0xeb   :  { %v362_v55 = vmul.f32 0.0, %v359_v54  ;;  %v2308_v47 = vpop.eup %2307 }
  0xec   :  { %212 = vst.msk [vmem:[#allocation2 + $0x20] sm:$0xff] %vm207_vm2, %v2308_v47  ;;  %v2310_v48 = vpop.eup %2309 }
  0xed   :  { %v363_v56 = vpack.c.bf16 %v362_v55, %v362_v55  ;;  %215 = vst.msk [vmem:[#allocation2 + $0x38] sm:$0xff] %vm207_vm2, %v2310_v48 }
  0xee   :  { %v2312_v49 = vpop.eup %2311  ;;  %v576_v16 = vld [vmem:[#allocation2 + $0x8] sm:$0xff] }
  0xef   :  { %2044 = vmatmul.mubr.msk.bf16.vlgmr.msra.gmra.mxu0 %vm207_vm2, %v363_v56  ;;  %2056 = vmatmul.mubr.msk.bf16.vlgmr.msra.gmra.mxu1 %vm207_vm2, %v363_v56  ;;  %213 = vst.msk [vmem:[#allocation2 + $0x28] sm:$0xff] %vm207_vm2, %v2312_v49 }
  0xf0   :  { %2063 = vmatprep.mubr.msk.bf16.mxu0 %vm2341_vm1, %v2340_v15  ;;  %2068 = vmatpush3.bf16.msra.mxu1 %v2467_v12 }
  0xf1   :  { %2069 = vmatprep.subr.bf16.mxu1 %v2340_v15  ;;  %2075 = vmatprep.mubr.msk.bf16.mxu1 %vm2341_vm1, %v2340_v15 }
  0xf2   :  { %2060 = vmatpush3.bf16.msra.mxu0 %v2599_v29 }
  0xf3   :  { %2061 = vmatprep.subr.bf16.mxu0 %v2340_v15 }
  0xf4   :  { %2070 = vmatpush3.bf16.msra.mxu1 %v2491_v17 }
  0xf5   :  { %2071 = vmatprep.subr.bf16.mxu1 %v2340_v15 }
  0xf6   :  { %2062 = vmatpush3.bf16.msra.mxu0 %v2606_v45 }
  0xf7   :  { %2079 = vmatprep.subr.bf16.mxu0 %v2340_v15 }
  0xf8   :  { %2072 = vmatpush3.bf16.msra.mxu1 %v2524_v25 }
  0xf9   :  { %2073 = vmatprep.subr.bf16.mxu1 %v2340_v15 }
  0xfc   :  { %2074 = vmatpush3.bf16.msra.mxu1 %v2537_v27 }
  0xfd   :  { %2091 = vmatprep.subr.bf16.mxu1 %v2340_v15 }
 0x1af   :  { %v431_v52 = vpop.f32.mrf.mxu0  ;;  %v507_v53 = vpop.f32.mrf.mxu1 }
 0x1b0   :  { %v432_v54 = vadd.f32 %v2617_v50, %v431_v52 }
 0x1b1   :  { %v2045_v55 = vpop.f32.mrf.mxu0  ;;  %v2057_v56 = vpop.f32.mrf.mxu1 }
 0x1b2   :  { %v437_v57 = vsub.f32 %v2622_v51, %v432_v54  ;;  %570 = vst.msk [vmem:[#allocation4] sm:$0xff] %vm97_vm0, %v432_v54  ;;  %v578_v55 = vld [vmem:[#allocation3 + $0x8] sm:$0xff] }
 0x1b3   :  { %v434_v58 = vpop.f32.mrf.mxu0  ;;  %v510_v59 = vpop.f32.mrf.mxu1 }
 0x1b4   :  { %v446_v60 = vmul.f32 %v437_v57, %v2442_v6  ;;  %v438_v31 = vand.u32 2147483647, %v437_v57 }
 0x1b5   :  { %v2046_v61 = vpop.f32.mrf.mxu0  ;;  %v2058_v62 = vpop.f32.mrf.mxu1 }
 0x1b6   :  { %v447_v63 = vadd.f32 %v446_v60, %v432_v54  ;;  %v439_v38 = vmul.f32 %v438_v31, %v2442_v6  ;;  %v729_v61 = vld [vmem:[#allocation2 + $0x10] sm:$0xff] }
 0x1b8   :  { %v448_v0 = vpack.c.bf16 %v447_v63, %v447_v63  ;;  %v444_v48 = vmul.f32 %v1854_v41, %v439_v38  ;;  %v731_v38 = vld [vmem:[#allocation3 + $0x10] sm:$0xff] }
 0x1ba   :  { %2064 = vmatmul.mubr.msk.bf16.vlgmr.msra.gmra.mxu0 %vm97_vm0, %v448_v0  ;;  %v2706_v0 = vld [vmem:[%s3116_s0 + $0x10] sm:$0xff] }
 0x1bb   :  { %2080 = vmatpush3.bf16.msra.mxu0 %v2475_v14  ;;  %2087 = vmatprep.mubr.msk.bf16.mxu0 %vm2341_vm1, %v2340_v15 }
 0x1bc   :  { %2081 = vmatprep.subr.bf16.mxu0 %v2340_v15 }
 0x1bf   :  { %2082 = vmatpush3.bf16.msra.mxu0 %v2496_v18 }
 0x1c0   :  { %2083 = vmatprep.subr.bf16.mxu0 %v2340_v15 }
 0x1c3   :  { %2084 = vmatpush3.bf16.msra.mxu0 %v2530_v26 }
 0x1c4   :  { %2085 = vmatprep.subr.bf16.mxu0 %v2340_v15 }
 0x1c7   :  { %2086 = vmatpush3.bf16.msra.mxu0 %v2546_v28 }
 0x1c8   :  { %2099 = vmatprep.subr.bf16.mxu0 %v2340_v15 }
 0x27a   :  { %v562_v1 = vpop.f32.mrf.mxu0 }
 0x27b   :  { %v563_v2 = vadd.f32 %v562_v1, %v507_v53 }
 0x27c   :  { %v2065_v4 = vpop.f32.mrf.mxu0 }
 0x27d   :  { %v568_v5 = vadd.f32 %v563_v2, %v360_v3 }
 0x27e   :  { %v565_v8 = vpop.f32.mrf.mxu0 }
 0x27f   :  { %2313 = vtanh.f32 %v568_v5 }
 0x280   :  { %v2066_v11 = vpop.f32.mrf.mxu0 }
 0x28c   :  { %v2314_v13 = vpop.eup %2313 }
 0x28d   :  { %v580_v21 = vmul.f32 %v2314_v13, %v576_v16 }
 0x28f   :  { %v581_v22 = vpack.c.bf16 %v580_v21, %v580_v21 }
 0x291   :  { %2076 = vmatmul.mubr.msk.bf16.vlgmr.msra.gmra.mxu1 %vm207_vm2, %v581_v22  ;;  %2088 = vmatmul.mubr.msk.bf16.vlgmr.msra.gmra.mxu0 %vm207_vm2, %v581_v22  ;;  %v1872_v22 = vld [vmem:[%s3119_s3 + $0x2] ss:$0 sm:$0xff] }
 0x292   :  { %2092 = vmatpush3.bf16.msra.mxu1 %v2599_v29  ;;  %2095 = vmatprep.mubr.msk.bf16.mxu1 %vm2341_vm1, %v2340_v15 }
 0x293   :  { %2093 = vmatprep.subr.bf16.mxu1 %v2340_v15  ;;  %2100 = vmatpush3.bf16.msra.mxu0 %v2467_v12 }
 0x294   :  { %2101 = vmatprep.subr.bf16.mxu0 %v2340_v15  ;;  %2107 = vmatprep.mubr.msk.bf16.mxu0 %vm2341_vm1, %v2340_v15 }
 0x296   :  { %2094 = vmatpush3.bf16.msra.mxu1 %v2606_v45 }
 0x297   :  { %2111 = vmatprep.subr.bf16.mxu1 %v2340_v15  ;;  %2102 = vmatpush3.bf16.msra.mxu0 %v2491_v17 }
 0x298   :  { %2103 = vmatprep.subr.bf16.mxu0 %v2340_v15 }
 0x29b   :  { %2104 = vmatpush3.bf16.msra.mxu0 %v2524_v25 }
 0x29c   :  { %2105 = vmatprep.subr.bf16.mxu0 %v2340_v15 }
 0x29f   :  { %2106 = vmatpush3.bf16.msra.mxu0 %v2537_v27 }
 0x2a0   :  { %2123 = vmatprep.subr.bf16.mxu0 %v2340_v15 }
 0x351   :  { %v619_v24 = vpop.f32.mrf.mxu1  ;;  %v671_v30 = vpop.f32.mrf.mxu0 }
 0x352   :  { %v620_v32 = vadd.f32 %v2617_v50, %v619_v24 }
 0x353   :  { %v2077_v33 = vpop.f32.mrf.mxu1  ;;  %v2089_v34 = vpop.f32.mrf.mxu0 }
 0x354   :  { %v625_v35 = vsub.f32 %v2660_v23, %v620_v32  ;;  %723 = vst.msk [vmem:[#allocation4 + $0x8] sm:$0xff] %vm97_vm0, %v620_v32 }
 0x355   :  { %v622_v36 = vpop.f32.mrf.mxu1  ;;  %v674_v37 = vpop.f32.mrf.mxu0 }
 0x356   :  { %v626_v39 = vand.u32 2147483647, %v625_v35  ;;  %v634_v40 = vmul.f32 %v625_v35, %v2447_v7 }
 0x357   :  { %v2078_v43 = vpop.f32.mrf.mxu1  ;;  %v2090_v44 = vpop.f32.mrf.mxu0 }
 0x358   :  { %v627_v46 = vmul.f32 %v626_v39, %v2447_v7  ;;  %v635_v47 = vadd.f32 %v634_v40, %v620_v32  ;;  %v882_v44 = vld [vmem:[#allocation2 + $0x18] sm:$0xff] }
 0x35a   :  { %v632_v49 = vmul.f32 %v1866_v42, %v627_v46  ;;  %v636_v52 = vpack.c.bf16 %v635_v47, %v635_v47 }
 0x35c   :  { %v633_v53 = vadd.f32 %v632_v49, %v444_v48  ;;  %2096 = vmatmul.mubr.msk.bf16.vlgmr.msra.gmra.mxu1 %vm97_vm0, %v636_v52  ;;  %v2748_v48 = vld [vmem:[%s3116_s0 + $0x18] sm:$0xff] }
 0x35d   :  { %2112 = vmatpush3.bf16.msra.mxu1 %v2475_v14  ;;  %2119 = vmatprep.mubr.msk.bf16.mxu1 %vm2341_vm1, %v2340_v15 }
 0x35e   :  { %2113 = vmatprep.subr.bf16.mxu1 %v2340_v15 }
 0x361   :  { %2114 = vmatpush3.bf16.msra.mxu1 %v2496_v18 }
 0x362   :  { %2115 = vmatprep.subr.bf16.mxu1 %v2340_v15 }
 0x365   :  { %2116 = vmatpush3.bf16.msra.mxu1 %v2530_v26 }
 0x366   :  { %2117 = vmatprep.subr.bf16.mxu1 %v2340_v15 }
 0x369   :  { %2118 = vmatpush3.bf16.msra.mxu1 %v2546_v28 }
 0x36a   :  { %2131 = vmatprep.subr.bf16.mxu1 %v2340_v15 }
 0x41c   :  { %v714_v7 = vpop.f32.mrf.mxu1 }
 0x41d   :  { %v715_v54 = vadd.f32 %v714_v7, %v671_v30 }
 0x41e   :  { %v2097_v56 = vpop.f32.mrf.mxu1 }
 0x41f   :  { %v720_v57 = vadd.f32 %v715_v54, %v578_v55 }
 0x420   :  { %v717_v58 = vpop.f32.mrf.mxu1 }
 0x421   :  { %2315 = vtanh.f32 %v720_v57 }
 0x422   :  { %v2098_v59 = vpop.f32.mrf.mxu1 }
 0x42e   :  { %v2316_v60 = vpop.eup %2315 }
 0x42f   :  { %v733_v62 = vmul.f32 %v2316_v60, %v729_v61  ;;  %v1878_v60 = vld [vmem:[%s3119_s3 + $0x3] ss:$0 sm:$0xff] }
 0x431   :  { %v734_v63 = vpack.c.bf16 %v733_v62, %v733_v62 }
 0x433   :  { %2108 = vmatmul.mubr.msk.bf16.vlgmr.msra.gmra.mxu0 %vm207_vm2, %v734_v63  ;;  %2120 = vmatmul.mubr.msk.bf16.vlgmr.msra.gmra.mxu1 %vm207_vm2, %v734_v63 }
 0x434   :  { %2124 = vmatpush3.bf16.msra.mxu0 %v2599_v29  ;;  %2127 = vmatprep.mubr.msk.bf16.mxu0 %vm2341_vm1, %v2340_v15 }
 0x435   :  { %2125 = vmatprep.subr.bf16.mxu0 %v2340_v15  ;;  %2132 = vmatpush3.bf16.msra.mxu1 %v2467_v12 }
 0x436   :  { %2133 = vmatprep.subr.bf16.mxu1 %v2340_v15  ;;  %2139 = vmatprep.mubr.msk.bf16.mxu1 %vm2341_vm1, %v2340_v15 }
 0x438   :  { %2126 = vmatpush3.bf16.msra.mxu0 %v2606_v45 }
 0x439   :  { %2143 = vmatprep.subr.bf16.mxu0 %v2340_v15  ;;  %2134 = vmatpush3.bf16.msra.mxu1 %v2491_v17 }
 0x43a   :  { %2135 = vmatprep.subr.bf16.mxu1 %v2340_v15 }
 0x43d   :  { %2136 = vmatpush3.bf16.msra.mxu1 %v2524_v25 }
 0x43e   :  { %2137 = vmatprep.subr.bf16.mxu1 %v2340_v15 }
 0x441   :  { %2138 = vmatpush3.bf16.msra.mxu1 %v2537_v27 }
 0x442   :  { %2155 = vmatprep.subr.bf16.mxu1 %v2340_v15 }
 0x4f3   :  { %v772_v1 = vpop.f32.mrf.mxu0  ;;  %v824_v2 = vpop.f32.mrf.mxu1 }
 0x4f4   :  { %v773_v3 = vadd.f32 %v2617_v50, %v772_v1 }
 0x4f5   :  { %v2109_v4 = vpop.f32.mrf.mxu0  ;;  %v2121_v5 = vpop.f32.mrf.mxu1 }
 0x4f6   :  { %v778_v8 = vsub.f32 %v2706_v0, %v773_v3  ;;  %876 = vst.msk [vmem:[#allocation4 + $0x10] sm:$0xff] %vm97_vm0, %v773_v3 }
 0x4f7   :  { %v775_v11 = vpop.f32.mrf.mxu0  ;;  %v827_v13 = vpop.f32.mrf.mxu1 }
 0x4f8   :  { %v779_v16 = vand.u32 2147483647, %v778_v8  ;;  %v787_v21 = vmul.f32 %v778_v8, %v2454_v9  ;;  %v884_v11 = vld [vmem:[#allocation3 + $0x18] sm:$0xff] }
 0x4f9   :  { %v2110_v24 = vpop.f32.mrf.mxu0  ;;  %v2122_v30 = vpop.f32.mrf.mxu1 }
 0x4fa   :  { %v780_v31 = vmul.f32 %v779_v16, %v2454_v9  ;;  %v788_v32 = vadd.f32 %v787_v21, %v773_v3  ;;  %v1035_v30 = vld [vmem:[#allocation2 + $0x20] sm:$0xff] }
 0x4fc   :  { %v785_v33 = vmul.f32 %v1872_v22, %v780_v31  ;;  %v789_v34 = vpack.c.bf16 %v788_v32, %v788_v32 }
 0x4fe   :  { %2128 = vmatmul.mubr.msk.bf16.vlgmr.msra.gmra.mxu0 %vm97_vm0, %v789_v34  ;;  %v786_v35 = vadd.f32 %v785_v33, %v633_v53  ;;  %v2790_v33 = vld [vmem:[%s3116_s0 + $0x20] sm:$0xff] }
 0x4ff   :  { %2144 = vmatpush3.bf16.msra.mxu0 %v2475_v14  ;;  %2151 = vmatprep.mubr.msk.bf16.mxu0 %vm2341_vm1, %v2340_v15 }
 0x500   :  { %2145 = vmatprep.subr.bf16.mxu0 %v2340_v15 }
 0x503   :  { %2146 = vmatpush3.bf16.msra.mxu0 %v2496_v18 }
 0x504   :  { %2147 = vmatprep.subr.bf16.mxu0 %v2340_v15 }
 0x507   :  { %2148 = vmatpush3.bf16.msra.mxu0 %v2530_v26 }
 0x508   :  { %2149 = vmatprep.subr.bf16.mxu0 %v2340_v15 }
 0x50b   :  { %2150 = vmatpush3.bf16.msra.mxu0 %v2546_v28 }
 0x50c   :  { %2163 = vmatprep.subr.bf16.mxu0 %v2340_v15 }
 0x5be   :  { %v867_v36 = vpop.f32.mrf.mxu0 }
 0x5bf   :  { %v868_v37 = vadd.f32 %v867_v36, %v824_v2 }
 0x5c0   :  { %v2129_v39 = vpop.f32.mrf.mxu0 }
 0x5c1   :  { %v873_v40 = vadd.f32 %v868_v37, %v731_v38 }
 0x5c2   :  { %v870_v41 = vpop.f32.mrf.mxu0 }
 0x5c3   :  { %2317 = vtanh.f32 %v873_v40 }
 0x5c4   :  { %v2130_v42 = vpop.f32.mrf.mxu0 }
 0x5d0   :  { %v2318_v43 = vpop.eup %2317 }
 0x5d1   :  { %v886_v46 = vmul.f32 %v2318_v43, %v882_v44 }
 0x5d3   :  { %v887_v47 = vpack.c.bf16 %v886_v46, %v886_v46 }
 0x5d5   :  { %2140 = vmatmul.mubr.msk.bf16.vlgmr.msra.gmra.mxu1 %vm207_vm2, %v887_v47  ;;  %2152 = vmatmul.mubr.msk.bf16.vlgmr.msra.gmra.mxu0 %vm207_vm2, %v887_v47  ;;  %v1884_v47 = vld [vmem:[%s3119_s3 + $0x4] ss:$0 sm:$0xff] }
 0x5d6   :  { %2156 = vmatpush3.bf16.msra.mxu1 %v2599_v29  ;;  %2159 = vmatprep.mubr.msk.bf16.mxu1 %vm2341_vm1, %v2340_v15 }
 0x5d7   :  { %2157 = vmatprep.subr.bf16.mxu1 %v2340_v15  ;;  %2164 = vmatpush3.bf16.msra.mxu0 %v2467_v12 }
 0x5d8   :  { %2165 = vmatprep.subr.bf16.mxu0 %v2340_v15  ;;  %2171 = vmatprep.mubr.msk.bf16.mxu0 %vm2341_vm1, %v2340_v15 }
 0x5da   :  { %2158 = vmatpush3.bf16.msra.mxu1 %v2606_v45 }
 0x5db   :  { %2175 = vmatprep.subr.bf16.mxu1 %v2340_v15  ;;  %2166 = vmatpush3.bf16.msra.mxu0 %v2491_v17 }
 0x5dc   :  { %2167 = vmatprep.subr.bf16.mxu0 %v2340_v15 }
 0x5df   :  { %2168 = vmatpush3.bf16.msra.mxu0 %v2524_v25 }
 0x5e0   :  { %2169 = vmatprep.subr.bf16.mxu0 %v2340_v15 }
 0x5e3   :  { %2170 = vmatpush3.bf16.msra.mxu0 %v2537_v27 }
 0x5e4   :  { %2187 = vmatprep.subr.bf16.mxu0 %v2340_v15 }
 0x695   :  { %v925_v49 = vpop.f32.mrf.mxu1  ;;  %v977_v52 = vpop.f32.mrf.mxu0 }
 0x696   :  { %v926_v53 = vadd.f32 %v2617_v50, %v925_v49 }
 0x697   :  { %v2141_v7 = vpop.f32.mrf.mxu1  ;;  %v2153_v54 = vpop.f32.mrf.mxu0 }
 0x698   :  { %v931_v55 = vsub.f32 %v2748_v48, %v926_v53  ;;  %1029 = vst.msk [vmem:[#allocation4 + $0x18] sm:$0xff] %vm97_vm0, %v926_v53 }
 0x699   :  { %v928_v56 = vpop.f32.mrf.mxu1  ;;  %v980_v57 = vpop.f32.mrf.mxu0 }
 0x69a   :  { %v932_v58 = vand.u32 2147483647, %v931_v55  ;;  %v940_v59 = vmul.f32 %v931_v55, %v2459_v10  ;;  %v1037_v57 = vld [vmem:[#allocation3 + $0x20] sm:$0xff] }
 0x69b   :  { %v2142_v61 = vpop.f32.mrf.mxu1  ;;  %v2154_v62 = vpop.f32.mrf.mxu0 }
 0x69c   :  { %v933_v63 = vmul.f32 %v932_v58, %v2459_v10  ;;  %v941_v1 = vadd.f32 %v940_v59, %v926_v53 }
 0x69e   :  { %v938_v2 = vmul.f32 %v1878_v60, %v933_v63  ;;  %v942_v3 = vpack.c.bf16 %v941_v1, %v941_v1  ;;  %v1188_v63 = vld [vmem:[#allocation2 + $0x28] sm:$0xff] }
 0x6a0   :  { %2160 = vmatmul.mubr.msk.bf16.vlgmr.msra.gmra.mxu1 %vm97_vm0, %v942_v3  ;;  %v939_v4 = vadd.f32 %v938_v2, %v786_v35 }
 0x6a1   :  { %2176 = vmatpush3.bf16.msra.mxu1 %v2475_v14  ;;  %2183 = vmatprep.mubr.msk.bf16.mxu1 %vm2341_vm1, %v2340_v15 }
 0x6a2   :  { %2177 = vmatprep.subr.bf16.mxu1 %v2340_v15 }
 0x6a5   :  { %2178 = vmatpush3.bf16.msra.mxu1 %v2496_v18 }
 0x6a6   :  { %2179 = vmatprep.subr.bf16.mxu1 %v2340_v15 }
 0x6a9   :  { %2180 = vmatpush3.bf16.msra.mxu1 %v2530_v26 }
 0x6aa   :  { %2181 = vmatprep.subr.bf16.mxu1 %v2340_v15 }
 0x6ad   :  { %2182 = vmatpush3.bf16.msra.mxu1 %v2546_v28 }
 0x6ae   :  { %2195 = vmatprep.subr.bf16.mxu1 %v2340_v15 }
 0x760   :  { %v1020_v5 = vpop.f32.mrf.mxu1 }
 0x761   :  { %v1021_v8 = vadd.f32 %v1020_v5, %v977_v52 }
 0x762   :  { %v2161_v13 = vpop.f32.mrf.mxu1 }
 0x763   :  { %v1026_v16 = vadd.f32 %v1021_v8, %v884_v11 }
 0x764   :  { %v1023_v21 = vpop.f32.mrf.mxu1 }
 0x765   :  { %2319 = vtanh.f32 %v1026_v16 }
 0x766   :  { %v2162_v22 = vpop.f32.mrf.mxu1 }
 0x772   :  { %v2320_v24 = vpop.eup %2319 }
 0x773   :  { %v1039_v31 = vmul.f32 %v2320_v24, %v1035_v30 }
 0x775   :  { %v1040_v32 = vpack.c.bf16 %v1039_v31, %v1039_v31  ;;  %v1890_v31 = vld [vmem:[%s3119_s3 + $0x5] ss:$0 sm:$0xff] }
 0x777   :  { %2172 = vmatmul.mubr.msk.bf16.vlgmr.msra.gmra.mxu0 %vm207_vm2, %v1040_v32  ;;  %2184 = vmatmul.mubr.msk.bf16.vlgmr.msra.gmra.mxu1 %vm207_vm2, %v1040_v32 }
 0x778   :  { %2188 = vmatpush3.bf16.msra.mxu0 %v2599_v29  ;;  %2191 = vmatprep.mubr.msk.bf16.mxu0 %vm2341_vm1, %v2340_v15 }
 0x779   :  { %2189 = vmatprep.subr.bf16.mxu0 %v2340_v15  ;;  %2196 = vmatpush3.bf16.msra.mxu1 %v2467_v12 }
 0x77a   :  { %2197 = vmatprep.subr.bf16.mxu1 %v2340_v15  ;;  %2203 = vmatprep.mubr.msk.bf16.mxu1 %vm2341_vm1, %v2340_v15 }
 0x77c   :  { %2190 = vmatpush3.bf16.msra.mxu0 %v2606_v45 }
 0x77d   :  { %2207 = vmatprep.subr.bf16.mxu0 %v2340_v15  ;;  %2198 = vmatpush3.bf16.msra.mxu1 %v2491_v17 }
 0x77e   :  { %2199 = vmatprep.subr.bf16.mxu1 %v2340_v15 }
 0x781   :  { %2200 = vmatpush3.bf16.msra.mxu1 %v2524_v25 }
 0x782   :  { %2201 = vmatprep.subr.bf16.mxu1 %v2340_v15 }
 0x785   :  { %2202 = vmatpush3.bf16.msra.mxu1 %v2537_v27 }
 0x786   :  { %2219 = vmatprep.subr.bf16.mxu1 %v2340_v15 }
 0x837   :  { %v1078_v34 = vpop.f32.mrf.mxu0  ;;  %v1130_v35 = vpop.f32.mrf.mxu1 }
 0x838   :  { %v1079_v36 = vadd.f32 %v2617_v50, %v1078_v34 }
 0x839   :  { %v2173_v37 = vpop.f32.mrf.mxu0  ;;  %v2185_v38 = vpop.f32.mrf.mxu1 }
 0x83a   :  { %v1084_v39 = vsub.f32 %v2790_v33, %v1079_v36  ;;  %1182 = vst.msk [vmem:[#allocation4 + $0x20] sm:$0xff] %vm97_vm0, %v1079_v36 }
 0x83b   :  { %v1081_v40 = vpop.f32.mrf.mxu0  ;;  %v1133_v41 = vpop.f32.mrf.mxu1 }
 0x83c   :  { %v1085_v42 = vand.u32 2147483647, %v1084_v39  ;;  %v1093_v43 = vmul.f32 %v1084_v39, %v2502_v19 }
 0x83d   :  { %v2174_v44 = vpop.f32.mrf.mxu0  ;;  %v2186_v46 = vpop.f32.mrf.mxu1 }
 0x83e   :  { %v1086_v49 = vmul.f32 %v1085_v42, %v2502_v19  ;;  %v1094_v52 = vadd.f32 %v1093_v43, %v1079_v36  ;;  %v2853_v42 = vld [vmem:[#allocation4 + $0x10] sm:$0xff] }
 0x83f   :  { %v1707_v46 = vsub.f32 %v2706_v0, %v2853_v42 }
 0x840   :  { %v1095_v53 = vpack.c.bf16 %v1094_v52, %v1094_v52  ;;  %v1091_v7 = vmul.f32 %v1884_v47, %v1086_v49  ;;  %v2867_v47 = vld [vmem:[#allocation4] sm:$0xff] }
 0x842   :  { %2192 = vmatmul.mubr.msk.bf16.vlgmr.msra.gmra.mxu0 %vm97_vm0, %v1095_v53  ;;  %v1092_v54 = vadd.f32 %v1091_v7, %v939_v4 }
 0x843   :  { %2208 = vmatpush3.bf16.msra.mxu0 %v2475_v14  ;;  %2215 = vmatprep.mubr.msk.bf16.mxu0 %vm2341_vm1, %v2340_v15 }
 0x844   :  { %2209 = vmatprep.subr.bf16.mxu0 %v2340_v15 }
 0x847   :  { %2210 = vmatpush3.bf16.msra.mxu0 %v2496_v18 }
 0x848   :  { %2211 = vmatprep.subr.bf16.mxu0 %v2340_v15 }
 0x84b   :  { %2212 = vmatpush3.bf16.msra.mxu0 %v2530_v26 }
 0x84c   :  { %2213 = vmatprep.subr.bf16.mxu0 %v2340_v15 }
 0x84f   :  { %2214 = vmatpush3.bf16.msra.mxu0 %v2546_v28 }
 0x850   :  { %2227 = vmatprep.subr.bf16.mxu0 %v2340_v15 }
 0x902   :  { %v1173_v55 = vpop.f32.mrf.mxu0 }
 0x903   :  { %v1174_v56 = vadd.f32 %v1173_v55, %v1130_v35  ;;  %v2841_v35 = vld [vmem:[#allocation4 + $0x20] sm:$0xff] }
 0x904   :  { %v2193_v58 = vpop.f32.mrf.mxu0  ;;  %v2849_v40 = vsub.f32 %v2790_v33, %v2841_v35 }
 0x905   :  { %v1179_v59 = vadd.f32 %v1174_v56, %v1037_v57 }
 0x906   :  { %v1176_v60 = vpop.f32.mrf.mxu0  ;;  %v1650_v33 = vmul.f32 %v2849_v40, %v2502_v19  ;;  %v1765_v19 = vsub.f32 %v2622_v51, %v2867_v47 }
 0x907   :  { %2321 = vtanh.f32 %v1179_v59  ;;  %v1190_v60 = vld [vmem:[#allocation3 + $0x28] sm:$0xff] }
 0x908   :  { %v2194_v61 = vpop.f32.mrf.mxu0  ;;  %v1766_v0 = vmul.f32 %v1765_v19, %v2442_v6 }
 0x914   :  { %v2322_v62 = vpop.eup %2321 }
 0x915   :  { %v1192_v1 = vmul.f32 %v2322_v62, %v1188_v63 }
 0x917   :  { %v1193_v2 = vpack.c.bf16 %v1192_v1, %v1192_v1 }
 0x919   :  { %2204 = vmatmul.mubr.msk.bf16.vlgmr.msra.gmra.mxu1 %vm207_vm2, %v1193_v2  ;;  %2216 = vmatmul.mubr.msk.bf16.vlgmr.msra.gmra.mxu0 %vm207_vm2, %v1193_v2 }
 0x91a   :  { %2220 = vmatpush3.bf16.msra.mxu1 %v2599_v29  ;;  %2223 = vmatprep.mubr.msk.bf16.mxu1 %vm2341_vm1, %v2340_v15 }
 0x91b   :  { %2221 = vmatprep.subr.bf16.mxu1 %v2340_v15  ;;  %2228 = vmatpush3.bf16.msra.mxu0 %v2467_v12  ;;  %v1887_v12 = vld [vmem:[%s3116_s0 + $0x28] sm:$0xff] }
 0x91c   :  { %2229 = vmatprep.subr.bf16.mxu0 %v2340_v15  ;;  %2235 = vmatprep.mubr.msk.bf16.mxu0 %vm2341_vm1, %v2340_v15 }
 0x91e   :  { %2222 = vmatpush3.bf16.msra.mxu1 %v2606_v45 }
 0x91f   :  { %2239 = vmatprep.subr.bf16.mxu1 %v2340_v15  ;;  %2230 = vmatpush3.bf16.msra.mxu0 %v2491_v17 }
 0x920   :  { %2231 = vmatprep.subr.bf16.mxu0 %v2340_v15 }
 0x923   :  { %2232 = vmatpush3.bf16.msra.mxu0 %v2524_v25 }
 0x924   :  { %2233 = vmatprep.subr.bf16.mxu0 %v2340_v15 }
 0x927   :  { %2234 = vmatpush3.bf16.msra.mxu0 %v2537_v27 }
 0x928   :  { %2251 = vmatprep.subr.bf16.mxu0 %v2340_v15 }
 0x9d9   :  { %v1231_v3 = vpop.f32.mrf.mxu1  ;;  %v2832_v4 = vpop.f32.mrf.mxu0 }
 0x9da   :  { %v1232_v5 = vadd.f32 %v2617_v50, %v1231_v3 }
 0x9db   :  { %v2205_v17 = vpop.f32.mrf.mxu1  ;;  %v2217_v8 = vpop.f32.mrf.mxu0 }
 0x9dc   :  { %v1237_v11 = vsub.f32 %v1887_v12, %v1232_v5  ;;  %1335 = vst.msk [vmem:[#allocation4 + $0x28] sm:$0xff] %vm97_vm0, %v1232_v5  ;;  %v1893_v17 = vld [vmem:[%s3116_s0 + $0x30] sm:$0xff] }
 0x9dd   :  { %v1234_v13 = vpop.f32.mrf.mxu1  ;;  %v1286_v16 = vpop.f32.mrf.mxu0 }
 0x9de   :  { %v1238_v21 = vand.u32 2147483647, %v1237_v11  ;;  %v1246_v22 = vmul.f32 %v1237_v11, %v2507_v20 }
 0x9df   :  { %v2206_v24 = vpop.f32.mrf.mxu1  ;;  %v2218_v30 = vpop.f32.mrf.mxu0 }
 0x9e0   :  { %v1239_v32 = vmul.f32 %v1238_v21, %v2507_v20  ;;  %v1247_v34 = vadd.f32 %v1246_v22, %v1232_v5 }
 0x9e2   :  { %v1248_v36 = vpack.c.bf16 %v1247_v34, %v1247_v34  ;;  %v1244_v37 = vmul.f32 %v1890_v31, %v1239_v32  ;;  %v1896_v32 = vld [vmem:[%s3119_s3 + $0x6] ss:$0 sm:$0xff] }
 0x9e3   :  { %v2843_v38 = vld [vmem:[#allocation4 + $0x28] sm:$0xff] }
 0x9e4   :  { %2224 = vmatmul.mubr.msk.bf16.vlgmr.msra.gmra.mxu1 %vm97_vm0, %v1248_v36  ;;  %v1620_v39 = vsub.f32 %v1887_v12, %v2843_v38  ;;  %v2851_v41 = vadd.f32 %v1244_v37, %v1092_v54  ;;  %v1341_v12 = vld [vmem:[#allocation2 + $0x30] sm:$0xff] }
 0x9e5   :  { %2240 = vmatpush3.bf16.msra.mxu1 %v2475_v14  ;;  %2247 = vmatprep.mubr.msk.bf16.mxu1 %vm2341_vm1, %v2340_v15  ;;  %v1651_v14 = vadd.f32 %v1650_v33, %v2841_v35 }
 0x9e6   :  { %v1621_v43 = vmul.f32 %v1620_v39, %v2507_v20  ;;  %2241 = vmatprep.subr.bf16.mxu1 %v2340_v15  ;;  %v1708_v20 = vmul.f32 %v1707_v46, %v2454_v9  ;;  %v1767_v9 = vadd.f32 %v1766_v0, %v2867_v47 }
 0x9e8   :  { %v2861_v44 = vadd.f32 %v1621_v43, %v2843_v38 }
 0x9e9   :  { %2242 = vmatpush3.bf16.msra.mxu1 %v2496_v18  ;;  %v2881_v18 = vadd.f32 %v1708_v20, %v2853_v42 }
 0x9ea   :  { %1624 = vrot.lane.b32.xlu1 %v2861_v44, %s2342_s8  ;;  %2243 = vmatprep.subr.bf16.mxu1 %v2340_v15 }
 0x9ed   :  { %2244 = vmatpush3.bf16.msra.mxu1 %v2530_v26  ;;  %v2890_v26 = vld [vmem:[#allocation4 + $0x18] sm:$0xff] }
 0x9ee   :  { %1653 = vrot.lane.b32.xlu1 %v1651_v14, %s2342_s8  ;;  %2245 = vmatprep.subr.bf16.mxu1 %v2340_v15  ;;  %v2894_v51 = vsub.f32 %v2748_v48, %v2890_v26  ;;  %v1343_v14 = vld [vmem:[#allocation3 + $0x30] sm:$0xff] }
 0x9f0   :  { %v1645_v6 = vmul.f32 %v2894_v51, %v2459_v10 }
 0x9f1   :  { %2246 = vmatpush3.bf16.msra.mxu1 %v2546_v28 }
 0x9f2   :  { %1711 = vrot.lane.b32.xlu1 %v2881_v18, %s2342_s8  ;;  %2259 = vmatprep.subr.bf16.mxu1 %v2340_v15  ;;  %v2903_v53 = vadd.f32 %v1645_v6, %v2890_v26 }
 0x9f6   :  { %1769 = vrot.lane.b32.xlu1 %v1767_v9, %s2342_s8 }
 0xa5c   :  { %v2898_v49 = vpop.permute.xlu1 %1624 }
 0xa5d   :  { %v1627_v28 = vadd.f32 %v2881_v18, %v2898_v49 }
 0xa5f   :  { %v1628_v52 = vmul.f32 0.5, %v1627_v28  ;;  %v1494_v28 = vld [vmem:[#allocation2 + $0x38] sm:$0xff] }
 0xa60   :  { %v2905_v7 = vpop.permute.xlu1 %1653 }
 0xa61   :  { %1629 = vst.msk [vmem:[%s3128_s12 + $0x10] sm:$0xff] %vm1570_vm3, %v1628_v52  ;;  %v1656_v10 = vadd.f32 %v2905_v7, %v2903_v53  ;;  %v1666_v48 = vsub.f32 %v2903_v53, %v2905_v7 }
 0xa63   :  { %v1657_v54 = vmul.f32 0.5, %v1656_v10 }
 0xa64   :  { %v2915_v55 = vpop.permute.xlu1 %1711 }
 0xa65   :  { %1658 = vst.msk [vmem:[%s3128_s12 + $0x18] sm:$0xff] %vm1570_vm3, %v1657_v54  ;;  %v1714_v56 = vadd.f32 %v2915_v55, %v2861_v44 }
 0xa67   :  { %v1715_v57 = vmul.f32 0.5, %v1714_v56 }
 0xa69   :  { %1716 = vst.msk [vmem:[%s3128_s12 + $0x28] sm:$0xff] %vm1570_vm3, %v1715_v57 }
 0xaa4   :  { %v1326_v58 = vpop.f32.mrf.mxu1 }
 0xaa5   :  { %v1327_v59 = vadd.f32 %v1326_v58, %v2832_v4  ;;  %v2327_v4 = vld [vmem:[%s3122_s6 + $0x18] sm:$0xff]  }
 0xaa6   :  { %v2225_v61 = vpop.f32.mrf.mxu1 }
 0xaa7   :  { %v1332_v62 = vadd.f32 %v1327_v59, %v1190_v60  ;;  %v1899_v60 = vld [vmem:[%s3116_s0 + $0x38] sm:$0xff] }
 0xaa8   :  { %v1329_v63 = vpop.f32.mrf.mxu1 }
 0xaa9   :  { %2323 = vtanh.f32 %v1332_v62 }
 0xaaa   :  { %v2226_v1 = vpop.f32.mrf.mxu1 }
 0xaab   :  { %v1589_v1 = vld [vmem:[%s3117_s1 + $0x30] sm:$0xff] }
 0xab6   :  { %v2324_v2 = vpop.eup %2323 }
 0xab7   :  { %v1345_v3 = vmul.f32 %v2324_v2, %v1341_v12 }
 0xab9   :  { %v1346_v5 = vpack.c.bf16 %v1345_v3, %v1345_v3 }
 0xabb   :  { %2236 = vmatmul.mubr.msk.bf16.vlgmr.msra.gmra.mxu0 %vm207_vm2, %v1346_v5  ;;  %2248 = vmatmul.mubr.msk.bf16.vlgmr.msra.gmra.mxu1 %vm207_vm2, %v1346_v5  ;;  %v2982_v5 = vpop.permute.xlu1 %1769 }
 0xabc   :  { %2252 = vmatpush3.bf16.msra.mxu0 %v2599_v29  ;;  %2255 = vmatprep.mubr.msk.bf16.mxu0 %vm2341_vm1, %v2340_v15  ;;  %v2328_v29 = vld [vmem:[%s3122_s6 + $0x10] sm:$0xff]  }
 0xabd   :  { %2253 = vmatprep.subr.bf16.mxu0 %v2340_v15  ;;  %2260 = vmatpush3.bf16.msra.mxu1 %v2327_v4  ;;  %v1676_v4 = vld [vmem:[%s3117_s1 + $0x18] sm:$0xff] }
 0xabe   :  { %2261 = vmatprep.subr.bf16.mxu1 %v2340_v15  ;;  %2267 = vmatprep.mubr.msk.bf16.mxu1 %vm2341_vm1, %v2340_v15 }
 0xac0   :  { %2254 = vmatpush3.bf16.msra.mxu0 %v2606_v45 }
 0xac1   :  { %2262 = vmatpush3.bf16.msra.mxu1 %v2328_v29  ;;  %v2987_v29 = vld [vmem:[#allocation4 + $0x8] sm:$0xff] }
 0xac2   :  { %2263 = vmatprep.subr.bf16.mxu1 %v2340_v15 }
 0xac5   :  { %2264 = vmatpush3.bf16.msra.mxu1 %v2524_v25 }
 0xac6   :  { %2265 = vmatprep.subr.bf16.mxu1 %v2340_v15  ;;  %v2329_v15 = vld [vmem:[%s3117_s1 + $0x30] sm:$0xff] }
 0xac9   :  { %2266 = vmatpush3.bf16.msra.mxu1 %v2537_v27 }
 0xb7b   :  { %v1384_v8 = vpop.f32.mrf.mxu0  ;;  %v1436_v11 = vpop.f32.mrf.mxu1 }
 0xb7c   :  { %v1385_v45 = vadd.f32 %v2617_v50, %v1384_v8 }
 0xb7d   :  { %v2237_v13 = vpop.f32.mrf.mxu0  ;;  %v2249_v16 = vpop.f32.mrf.mxu1 }
 0xb7e   :  { %v1390_v21 = vsub.f32 %v1893_v17, %v1385_v45  ;;  %1488 = vst.msk [vmem:[#allocation4 + $0x30] sm:$0xff] %vm97_vm0, %v1385_v45  ;;  %v1734_v16 = vld [vmem:[%s3117_s1 + $0x8] sm:$0xff] }
 0xb7f   :  { %v1387_v22 = vpop.f32.mrf.mxu0  ;;  %v1439_v24 = vpop.f32.mrf.mxu1 }
 0xb80   :  { %v1391_v25 = vand.u32 2147483647, %v1390_v21  ;;  %v1399_v27 = vmul.f32 %v2329_v15, %v1390_v21 }
 0xb81   :  { %v2238_v30 = vpop.f32.mrf.mxu0  ;;  %v2250_v31 = vpop.f32.mrf.mxu1 }
 0xb82   :  { %v1400_v34 = vadd.f32 %v1399_v27, %v1385_v45  ;;  %v1392_v36 = vmul.f32 %v2329_v15, %v1391_v25  ;;  %v1736_v45 = vsub.f32 %v2660_v23, %v2987_v29  ;;  %v1902_v15 = vld [vmem:[%s3119_s3 + $0x7] ss:$0 sm:$0xff] }
 0xb84   :  { %v1401_v37 = vpack.c.bf16 %v1400_v34, %v1400_v34  ;;  %v1397_v39 = vmul.f32 %v1896_v32, %v1392_v36  ;;  %v1737_v22 = vmul.f32 %v1736_v45, %v1734_v16  ;;  %v1555_v32 = vld [vmem:[%s3116_s0] sm:$0xff] }
 0xb85   :  { %v2964_v59 = vld [vmem:[#allocation4 + $0x30] sm:$0xff]  ;;  %v1556_v34 = vsub.f32 %v1555_v32, %v2867_v47  ;;  %v1554_v36 = vld [vmem:[%s3117_s1] sm:$0xff] }
 0xb86   :  { %2256 = vmatmul.mubr.msk.bf16.vlgmr.msra.gmra.mxu0 %vm97_vm0, %v1401_v37  ;;  %v1398_v43 = vadd.f32 %v1397_v39, %v2851_v41  ;;  %v1591_v63 = vsub.f32 %v1893_v17, %v2964_v59  ;;  %v1738_v23 = vadd.f32 %v1737_v22, %v2987_v29 }
 0xb87   :  { %v1557_v37 = vmul.f32 %v1556_v34, %v1554_v36 }
 0xb88   :  { %v1592_v3 = vmul.f32 %v1591_v63, %v1589_v1 }
 0xb89   :  { %v1558_v39 = vadd.f32 %v2867_v47, %v1557_v37 }
 0xb8a   :  { %v2994_v8 = vadd.f32 %v1592_v3, %v2964_v59 }
 0xc46   :  { %v1479_v33 = vpop.f32.mrf.mxu0 }
 0xc47   :  { %v1480_v46 = vadd.f32 %v1479_v33, %v1436_v11  ;;  %v1679_v11 = vmul.f32 %v1676_v4, %v2894_v51  ;;  %v1671_v33 = vld [vmem:[%s3117_s1 + $0x20] sm:$0xff] }
 0xc48   :  { %v2257_v20 = vpop.f32.mrf.mxu0 }
 0xc49   :  { %v1485_v19 = vadd.f32 %v1480_v46, %v1343_v14  ;;  %v1680_v21 = vadd.f32 %v1679_v11, %v2890_v26 }
 0xc4a   :  { %v1482_v0 = vpop.f32.mrf.mxu0 }
 0xc4b   :  { %2325 = vtanh.f32 %v1485_v19  ;;  %v1674_v19 = vmul.f32 %v1671_v33, %v2849_v40 }
 0xc4c   :  { %v2258_v9 = vpop.f32.mrf.mxu0 }
 0xc4d   :  { %v1637_v9 = vsub.f32 %v2881_v18, %v2898_v49 }
 0xc58   :  { %v2326_v6 = vpop.eup %2325 }
 0xc59   :  { %v1496_v52 = vmul.f32 %v2326_v6, %v1494_v28 }
 0xc5b   :  { %v1497_v10 = vpack.c.bf16 %v1496_v52, %v1496_v52 }
 0xc5d   :  { %2268 = vmatmul.mubr.msk.bf16.vlgmr.msra.gmra.mxu1 %vm207_vm2, %v1497_v10 }
 0xd1d   :  { %v1535_v54 = vpop.f32.mrf.mxu1 }
 0xd1e   :  { %v1536_v56 = vadd.f32 %v2617_v50, %v1535_v54  ;;  %v1900_v50 = vld [vmem:[%s3117_s1 + $0x38] sm:$0xff] }
 0xd1f   :  { %v2269_v57 = vpop.f32.mrf.mxu1 }
 0xd20   :  { %1551 = vst.msk [vmem:[#allocation4 + $0x38] sm:$0xff] %vm97_vm0, %v1536_v56  ;;  %v1541_v51 = vsub.f32 %v1899_v60, %v1536_v56  ;;  %v1675_v56 = vadd.f32 %v1674_v19, %v2841_v35 }
 0xd21   :  { %v1538_v41 = vpop.f32.mrf.mxu1 }
 0xd22   :  { %v1542_v24 = vand.u32 2147483647, %v1541_v51  ;;  %v1638_v41 = vand.u32 2147483647, %v1637_v9 }
 0xd23   :  { %v2270_v58 = vpop.f32.mrf.mxu1 }
 0xd24   :  { %v1543_v25 = vmul.f32 %v1900_v50, %v1542_v24  ;;  %v1667_v58 = vand.u32 2147483647, %v1666_v48 }
 0xd26   :  { %v1548_v27 = vmul.f32 %v1902_v15, %v1543_v25 }
 0xd27   :  { %v2969_v61 = vld [vmem:[#allocation4 + $0x38] sm:$0xff] }
 0xd28   :  { %v1561_v62 = vsub.f32 %v1899_v60, %v2969_v61  ;;  %v1549_v30 = vadd.f32 %v1548_v27, %v1398_v43  ;;  %v1724_v60 = vsub.f32 %v2861_v44, %v2915_v55 }
 0xd2a   :  { %v1562_v2 = vmul.f32 %v1900_v50, %v1561_v62  ;;  %v1785_v31 = vsel %vm97_vm0, %v1549_v30, 0.0 }
 0xd2c   :  { %v2980_v12 = vadd.f32 %v1562_v2, %v2969_v61 }
 0xd2e   :  { %1565 = vrot.lane.b32.xlu0 %v2980_v12, %s2342_s8  ;;  %v1772_v17 = vadd.f32 %v2982_v5, %v2980_v12  ;;  %v1782_v44 = vsub.f32 %v2980_v12, %v2982_v5 }
 0xd30   :  { %v1773_v13 = vmul.f32 0.5, %v1772_v17  ;;  %v1725_v17 = vand.u32 2147483647, %v1724_v60  ;;  %v1783_v45 = vand.u32 2147483647, %v1782_v44 }
 0xd32   :  { %1595 = vrot.lane.b32.xlu0 %v2994_v8, %s2342_s8  ;;  %1774 = vst.msk [vmem:[%s3128_s12 + $0x38] sm:$0xff] %vm1570_vm3, %v1773_v13 }
 0xd36   :  { %1682 = vrot.lane.b32.xlu0 %v1680_v21, %s2342_s8 }
 0xd3a   :  { %1740 = vrot.lane.b32.xlu0 %v1738_v23, %s2342_s8 }
 0xd59   :  { %1786 = vadd.xlane.f32.xlu0 %v1785_v31 }
 0xd6f   :  { %1573 = vrot.lane.b32.xlu0 %v2969_v61, %s2342_s8 }
 0xd73   :  { %1631 = vrot.lane.b32.xlu0 %v2843_v38, %s2342_s8 }
 0xd77   :  { %1689 = vrot.lane.b32.xlu0 %v2890_v26, %s2342_s8 }
 0xd7b   :  { %1747 = vrot.lane.b32.xlu0 %v2987_v29, %s2342_s8 }
 0xda0   :  { %v1566_v43 = vpop.permute.xlu0 %1565 }
 0xda1   :  { %v1568_v46 = vadd.f32 %v1566_v43, %v1558_v39  ;;  %v1579_v20 = vsub.f32 %v1558_v39, %v1566_v43 }
 0xda3   :  { %v1569_v14 = vmul.f32 0.5, %v1568_v46  ;;  %v1580_v52 = vand.u32 2147483647, %v1579_v20 }
 0xda4   :  { %v1596_v0 = vpop.permute.xlu0 %1595 }
 0xda5   :  { %1571 = vst.msk [vmem:[%s3128_s12] sm:$0xff] %vm1570_vm3, %v1569_v14  ;;  %v1598_v6 = vadd.f32 %v1738_v23, %v1596_v0  ;;  %v1608_v28 = vsub.f32 %v1738_v23, %v1596_v0 }
 0xda7   :  { %v1599_v10 = vmul.f32 0.5, %v1598_v6  ;;  %v1609_v54 = vand.u32 2147483647, %v1608_v28 }
 0xda8   :  { %v1683_v57 = vpop.permute.xlu0 %1682 }
 0xda9   :  { %1600 = vst.msk [vmem:[%s3128_s12 + $0x8] sm:$0xff] %vm1570_vm3, %v1599_v10  ;;  %v1610_v40 = vadd.f32 %v1609_v54, %v1580_v52  ;;  %v1685_v18 = vadd.f32 %v1683_v57, %v1675_v56  ;;  %v1695_v49 = vsub.f32 %v1675_v56, %v1683_v57 }
 0xdab   :  { %v1639_v62 = vadd.f32 %v1638_v41, %v1610_v40  ;;  %v1686_v63 = vmul.f32 0.5, %v1685_v18  ;;  %v1696_v2 = vand.u32 2147483647, %v1695_v49 }
 0xdac   :  { %v1741_v50 = vpop.permute.xlu0 %1740 }
 0xdad   :  { %v1668_v1 = vadd.f32 %v1667_v58, %v1639_v62  ;;  %1687 = vst.msk [vmem:[%s3128_s12 + $0x20] sm:$0xff] %vm1570_vm3, %v1686_v63  ;;  %v1743_v3 = vadd.f32 %v1741_v50, %v2994_v8  ;;  %v1753_v4 = vsub.f32 %v2994_v8, %v1741_v50 }
 0xdaf   :  { %v1697_v53 = vadd.f32 %v1696_v2, %v1668_v1  ;;  %v1744_v7 = vmul.f32 0.5, %v1743_v3  ;;  %v1754_v55 = vand.u32 2147483647, %v1753_v4 }
 0xdb1   :  { %v1726_v48 = vadd.f32 %v1725_v17, %v1697_v53  ;;  %1745 = vst.msk [vmem:[%s3128_s12 + $0x30] sm:$0xff] %vm1570_vm3, %v1744_v7 }
 0xdb3   :  { %v1755_v11 = vadd.f32 %v1754_v55, %v1726_v48 }
 0xdb5   :  { %v1784_v13 = vadd.f32 %v1783_v45, %v1755_v11 }
 0xdb7   :  { %v1795_v16 = vsel %vm1570_vm3, %v1784_v13, 0.0 }
 0xdb8   :  { %1796 = vadd.xlane.f32.xlu1 %v1795_v16 }
 0xdc9   :  { %1602 = vrot.lane.b32.xlu1 %v2964_v59, %s2342_s8 }
 0xdcd   :  { %1660 = vrot.lane.b32.xlu1 %v2841_v35, %s2342_s8 }
 0xdd1   :  { %1718 = vrot.lane.b32.xlu1 %v2853_v42, %s2342_s8 }
 0xdd5   :  { %1776 = vrot.lane.b32.xlu1 %v2867_v47, %s2342_s8 }
 0xde2   :  { %v1787_v12 = vpop.xlane.xlu0 %1786 }
 0xde3   :  { %v1788_v5 = vrot.slane %v1787_v12, 4 }
 0xde5   :  { %v1789_v8 = vadd.f32 %v1788_v5, %v1787_v12 }
 0xde6   :  { %v1574_v21 = vpop.permute.xlu0 %1573 }
 0xde7   :  { %v1790_v22 = vrot.slane %v1789_v8, 2  ;;  %v1576_v23 = vadd.f32 %v2867_v47, %v1574_v21 }
 0xde9   :  { %v1577_v51 = vmul.f32 0.5, %v1576_v23  ;;  %v1791_v24 = vadd.f32 %v1790_v22, %v1789_v8 }
 0xdea   :  { %v1632_v25 = vpop.permute.xlu0 %1631 }
 0xdeb   :  { %1578 = vst.msk [vmem:[%s3129_s13] sm:$0xff] %vm1570_vm3, %v1577_v51  ;;  %v1634_v15 = vadd.f32 %v2853_v42, %v1632_v25  ;;  %v1792_v27 = vrot.slane %v1791_v24, 1 }
 0xded   :  { %v1635_v30 = vmul.f32 0.5, %v1634_v15  ;;  %v1793_v31 = vadd.f32 %v1792_v27, %v1791_v24 }
 0xdee   :  { %v1690_v32 = vpop.permute.xlu0 %1689 }
 0xdef   :  { %1636 = vst.msk [vmem:[%s3129_s13 + $0x10] sm:$0xff] %vm1570_vm3, %v1635_v30  ;;  %v1692_v47 = vadd.f32 %v1690_v32, %v2841_v35 }
 0xdf0   :  { %2271 = vpush %v1793_v31 }
 0xdf1   :  { %v1693_v34 = vmul.f32 0.5, %v1692_v47 }
 0xdf2   :  { %v1748_v36 = vpop.permute.xlu0 %1747 }
 0xdf3   :  { %1694 = vst.msk [vmem:[%s3129_s13 + $0x20] sm:$0xff] %vm1570_vm3, %v1693_v34  ;;  %v1750_v42 = vadd.f32 %v1748_v36, %v2964_v59 }
 0xdf5   :  { %v1751_v37 = vmul.f32 0.5, %v1750_v42 }
 0xdf7   :  { %1752 = vst.msk [vmem:[%s3129_s13 + $0x30] sm:$0xff] %vm1570_vm3, %v1751_v37 }
 0xe21   :  { %s2272_s18 = spop %2271 }
 0xe41   :  { %v1797_v39 = vpop.xlane.xlu1 %1796 }
 0xe42   :  { %v1798_v43 = vrot.slane %v1797_v39, 4 }
 0xe44   :  { %v1799_v33 = vadd.f32 %v1798_v43, %v1797_v39 }
 0xe45   :  { %v1603_v35 = vpop.permute.xlu1 %1602 }
 0xe46   :  { %v1800_v46 = vrot.slane %v1799_v33, 2  ;;  %v1605_v14 = vadd.f32 %v2987_v29, %v1603_v35 }
 0xe48   :  { %v1606_v20 = vmul.f32 0.5, %v1605_v14  ;;  %v1801_v19 = vadd.f32 %v1800_v46, %v1799_v33 }
 0xe49   :  { %v1661_v0 = vpop.permute.xlu1 %1660 }
 0xe4a   :  { %1607 = vst.msk [vmem:[%s3129_s13 + $0x8] sm:$0xff] %vm1570_vm3, %v1606_v20  ;;  %v1663_v59 = vadd.f32 %v1661_v0, %v2890_v26  ;;  %v1802_v9 = vrot.slane %v1801_v19, 1 }
 0xe4c   :  { %v1664_v6 = vmul.f32 0.5, %v1663_v59  ;;  %v1803_v28 = vadd.f32 %v1802_v9, %v1801_v19 }
 0xe4d   :  { %v1719_v52 = vpop.permute.xlu1 %1718 }
 0xe4e   :  { %1665 = vst.msk [vmem:[%s3129_s13 + $0x18] sm:$0xff] %vm1570_vm3, %v1664_v6  ;;  %v1721_v29 = vadd.f32 %v1719_v52, %v2843_v38 }
 0xe4f   :  { %2273 = vpush %v1803_v28 }
 0xe50   :  { %v1722_v10 = vmul.f32 0.5, %v1721_v29 }
 0xe51   :  { %v1777_v54 = vpop.permute.xlu1 %1776 }
 0xe52   :  { %1723 = vst.msk [vmem:[%s3129_s13 + $0x28] sm:$0xff] %vm1570_vm3, %v1722_v10  ;;  %v1779_v26 = vadd.f32 %v1777_v54, %v2969_v61 }
 0xe54   :  { %v1780_v56 = vmul.f32 0.5, %v1779_v26 }
 0xe56   :  { %1781 = vst.msk [vmem:[%s3129_s13 + $0x38] sm:$0xff] %vm1570_vm3, %v1780_v56 }
 0xe80   :  { %s2274_s3 = spop %2273 }
 0xe81   :  { %s1805_s19 = smul.f32 9.765625e-05, %s2274_s3 }
 0xe83   :  { %s1806_s20 = sadd.f32 %s2272_s18, %s1805_s19 }
 0xe85   :  { %1808 = sst [smem:[#allocation5]] %s1806_s20 }
 0xe86   :  { %1820 = dma.smem_to_hbm %s2343_s21, 16, %s3130_s14, [#allocation6]  }
 0xe87   :  { %2338 = dma.done.wait [#allocation6], 16  }
 0xe88   :  { %2339 = vsyncadd [#allocation6], 4294967280 }
 0xe89   :  { %1828 = sfence }
 0xe8a   :  { %1829 = vsyncpa [#allocation6], 1 }

</bundles_post_ra>
